<compile_context>
chip_gen: v6e
topology: v6e:2x2x1
jax: 0.10.0
libtpu: 0.0.40
codegen_flags: <defaults>
</compile_context>

<pallas_src>
import functools
import math

import jax
import jax.numpy as jnp
from jax.experimental import pallas as pl
from jax.experimental.pallas import tpu as pltpu

# ---- model hyper-params (match the PyTorch module) ----
EMBED_DIM = 64
FF_DIM = 4 * EMBED_DIM      # 256
MEM_SIZE = 20
NUM_HEADS = 2
VOCAB_SIZE = 50
VPAD = 128                  # lane-dense padded vocab width (ratio lives in lane VOCAB_SIZE)
VROWS = 64                  # sublane-padded vocab rows for the in-kernel one-hot embedding
HEAD_DIM = EMBED_DIM // NUM_HEADS
LN_EPS = 1e-5               # torch.nn.LayerNorm default
ENT_EPS = 1e-10             # from the reference forward
NEG_INF = -1e30             # additive mask for invalid (empty) memory key slots
ENT_SENTINEL = -1.0         # below any real entropy (>= -1e-10); marks empty memory slots


def _layernorm(z, g, b):
    mu = jnp.mean(z, axis=-1, keepdims=True)
    var = jnp.mean((z - mu) ** 2, axis=-1, keepdims=True)
    return (z - mu) * jax.lax.rsqrt(var + LN_EPS) * g + b


def _col_to_row(col, n):
    """(n,1) -> (1,n) without a transpose op: mask with eye, reduce over sublanes (XLU)."""
    eye = (jax.lax.broadcasted_iota(jnp.int32, (n, n), 0)
           == jax.lax.broadcasted_iota(jnp.int32, (n, n), 1)).astype(col.dtype)
    return jnp.sum(col * eye, axis=0, keepdims=True)


def xl_segments_kernel(tok_ref, emb_ref, wa_ref, wb_ref, v256_ref, v64_ref,
                       minx_ref, mine_ref,
                       out_ref, memx_out_ref, meme_out_ref,
                       memx_sc, meme_sc,
                       *, seg_len, init_len):
    """One grid step == one TransformerXL segment. Memory is carried in VMEM scratch.

    tok_ref     : (1, S, 1) int32   token ids of this segment (per-step block)
    emb_ref     : (64, E)  bf16     embedding table, rows >= vocab are zero (resident)
    wa_ref      : (2E, 4E) bf16     rows 0:E = fused [wq*scale | wk | wv@wo_h0 | wv@wo_h1],
                                    rows E:  = ffn w1                              (resident)
    wb_ref      : (4E+E, VPAD) bf16 rows 0:4E = ffn w2 (zero-padded lanes), rows 4E: = wout
    v256_ref    : (3, 4E) f32       [b_fused ; bf1 ; bout(zero-padded)]
    v64_ref     : (6, E)  f32       [out_proj b ; ln1 g ; ln1 b ; ff2 b ; ln2 g ; ln2 b]
    minx_ref    : (M, E)  f32       initial memory vectors (zero-padded)
    mine_ref    : (M, 1)  f32       initial memory entropies (sentinel-padded)
    out_ref     : (1, S, VPAD) f32  lanes 0:V = logits, lane V = kept-entropy ratio
    memx_out_ref: (M, E)  f32       final memory vectors   (written on the last step)
    meme_out_ref: (M, 1)  f32       final memory entropies (written on the last step)
    memx_sc     : (M, E)  f32       carried memory state
    meme_sc     : (M, 1)  f32       carried memory entropies
    """
    E, D, H, M, V = EMBED_DIM, HEAD_DIM, NUM_HEADS, MEM_SIZE, VOCAB_SIZE
    S = seg_len
    K = S + M                                     # fixed key/candidate count (slots masked)
    t = pl.program_id(0)

    # ---- one-time init of the carried memory state ----
    @pl.when(t == 0)
    def _():
        memx_sc[...] = minx_ref[...]
        meme_sc[...] = mine_ref[...]

    # memory length at the start of step t is a deterministic function of t
    ml = jnp.minimum(init_len + t * S, M)         # valid memory rows
    n_valid = S + ml                              # valid keys / candidates

    # ---- resident weights ----
    w_fused = wa_ref[0:E, :]                      # (E, 4E) bf16
    w1 = wa_ref[E:2 * E, :]                       # (E, 4E) bf16
    w2 = wb_ref[0:FF_DIM, :]                      # (4E, VPAD) bf16, lanes >= E zero
    wout = wb_ref[FF_DIM:FF_DIM + E, :]           # (E, VPAD) bf16, lanes >= V zero
    b_fused = v256_ref[0:1, :]
    bf1 = v256_ref[1:2, :]
    bout = v256_ref[2:3, 0:VPAD]
    bo, g1, be1 = v64_ref[0:1, :], v64_ref[1:2, :], v64_ref[2:3, :]
    bf2, g2, be2 = v64_ref[3:4, :], v64_ref[4:5, :], v64_ref[5:6, :]

    # ---- in-kernel embedding gather: one-hot matmul against the resident table ----
    tok = tok_ref[0]                                                       # (S, 1) int32
    onehot = (tok == jax.lax.broadcasted_iota(jnp.int32, (S, VROWS), 1)
              ).astype(jnp.bfloat16)
    x = jnp.dot(onehot, emb_ref[...], preferred_element_type=jnp.float32)  # (S, E) f32

    # ---- keys/values: [segment ; memory] (unmasked attention is key-order invariant) ----
    kv = jnp.concatenate([x, memx_sc[...]], axis=0)                        # (K, E) f32
    kmask = jax.lax.broadcasted_iota(jnp.int32, (S, K), 1) < n_valid       # (S, K)

    # fused [q*scale | k | v@out_proj(h0) | v@out_proj(h1)] projection (bf16 MXU, f32 acc)
    qkv = jnp.dot(kv.astype(jnp.bfloat16), w_fused,
                  preferred_element_type=jnp.float32) + b_fused            # (K, 4E) f32

    probs = []
    for h in range(H):                            # static unroll over the 2 heads
        qh = qkv[0:S, h * D:(h + 1) * D]          # (S, D), already scaled by 1/sqrt(D)
        kh = qkv[:, E + h * D:E + (h + 1) * D]    # (K, D)
        s = jax.lax.dot_general(qh, kh, (((1,), (1,)), ((), ())),
                                preferred_element_type=jnp.float32)        # (S, K)
        s = jnp.where(kmask, s, NEG_INF)
        s = s - jnp.max(s, axis=-1, keepdims=True)
        e = jnp.exp(s)
        # approx reciprocal runs on the EUP slot; swap approx=False for bit-level parity
        probs.append(e * pl.reciprocal(jnp.sum(e, axis=-1, keepdims=True), approx=True))

    # single PV matmul: (S, H*K) @ (H*K, E); V is already folded through out_proj
    p_cat = jnp.concatenate(probs, axis=1)                                 # (S, 2K)
    vo_cat = jnp.concatenate(
        [qkv[:, 2 * E + h * E:2 * E + (h + 1) * E] for h in range(H)], axis=0)  # (2K, E)
    attn = jnp.dot(p_cat, vo_cat, preferred_element_type=jnp.float32) + bo

    # attention entropy per query token (head-averaged probabilities, batch index 0)
    aw = (probs[0] + probs[1]) * 0.5
    ent_col = -jnp.sum(aw * jnp.log(aw + ENT_EPS), axis=-1, keepdims=True)  # (S, 1)

    # residual + layernorm + feed-forward + layernorm + vocab projection
    x2 = _layernorm(x + attn, g1, be1)
    h1 = jnp.maximum(jnp.dot(x2.astype(jnp.bfloat16), w1,
                             preferred_element_type=jnp.float32) + bf1, 0.0)
    ffo = jnp.dot(h1.astype(jnp.bfloat16), w2,
                  preferred_element_type=jnp.float32)[:, 0:E] + bf2
    y = _layernorm(x2 + ffo, g2, be2)
    logits = jnp.dot(y.astype(jnp.bfloat16), wout,
                     preferred_element_type=jnp.float32) + bout            # (S, VPAD)

    # ---- in-kernel memory update (top-MEM_SIZE by entropy over <= 28 candidates) ----
    # Candidate order is [segment ; memory]; only exact entropy ties differ from the
    # reference's [memory ; segment] order (measure-zero with real-valued entropies).
    cand_ent = jnp.concatenate([ent_col, meme_sc[...]], axis=0)            # (K, 1)
    valid_col = jax.lax.broadcasted_iota(jnp.int32, (K, 1), 0) < n_valid
    e_col = jnp.where(valid_col, cand_ent, ENT_SENTINEL)
    e_row = _col_to_row(e_col, K)                                          # (1, K)
    ii = jax.lax.broadcasted_iota(jnp.int32, (K, K), 0)
    jj = jax.lax.broadcasted_iota(jnp.int32, (K, K), 1)
    beats = (e_col > e_row) | ((e_col == e_row) & (ii < jj))               # i beats j
    rank = jnp.sum(beats.astype(jnp.float32), axis=0,
                   keepdims=True).astype(jnp.int32)                        # (1, K)
    sel = (rank == jax.lax.broadcasted_iota(jnp.int32, (M, K), 0)
           ).astype(jnp.float32)                                           # (M, K) one-hot
    new_mem_x = jnp.dot(sel, kv, preferred_element_type=jnp.float32)       # (M, E)
    new_mem_ent = jnp.sum(sel * e_row, axis=1, keepdims=True)              # (M, 1)
    kept = jnp.sum(new_mem_ent)
    total = jnp.sum(jnp.where(valid_col, cand_ent, 0.0)) + ENT_EPS
    evict = n_valid > M
    ratio = jnp.where(evict, kept / total, 1.0)

    @pl.when(evict)
    def _():
        memx_sc[...] = new_mem_x
        meme_sc[...] = new_mem_ent

    @pl.when(jnp.logical_not(evict))
    def _():
        memx_sc[pl.ds(ml, S), :] = x
        meme_sc[pl.ds(ml, S), :] = ent_col

    # ---- single lane-dense (S, 128) store; lane VOCAB_SIZE carries this segment's ratio --
    col = jax.lax.broadcasted_iota(jnp.int32, (S, VPAD), 1)
    out_ref[0] = jnp.where(col == V, ratio, logits)

    # final carried memory written back once (constant-index output block)
    @pl.when(t == pl.num_programs(0) - 1)
    def _():
        memx_out_ref[...] = memx_sc[...]
        meme_out_ref[...] = meme_sc[...]


# -------------------------------- host-side glue ----------------------------------------

@functools.partial(jax.jit, static_argnames=("init_len",))
def _run_segments(tokens, minx, mine, params, *, init_len):
    """tokens: (NSEG, S) int32. One pallas_call; the grid iterates segments sequentially."""
    nseg, S = tokens.shape
    tok3 = tokens.reshape(nseg, S, 1).astype(jnp.int32)
    kernel = functools.partial(xl_segments_kernel, seg_len=S, init_len=init_len)

    def const(shape):
        return pl.BlockSpec(shape, lambda t, _s=shape: (0,) * len(_s))

    # TODO(synk): v7x's second TensorCore stays idle — the segment axis must be
    # "arbitrary" (memory carry); a leading "parallel" axis would need independent streams.
    out_pad, memx_out, meme_out = pl.pallas_call(
        kernel,
        grid=(nseg,),
        in_specs=[
            pl.BlockSpec((1, S, 1), lambda t: (t, 0, 0)),        # token ids (per segment)
            const((VROWS, EMBED_DIM)),                           # embedding table (resident)
            const((2 * EMBED_DIM, FF_DIM)),                      # wa (resident)
            const((FF_DIM + EMBED_DIM, VPAD)),                   # wb (resident)
            const((3, FF_DIM)),                                  # vec256 (resident)
            const((6, EMBED_DIM)),                               # vec64 (resident)
            const((MEM_SIZE, EMBED_DIM)),                        # initial memory x
            const((MEM_SIZE, 1)),                                # initial memory entropy
        ],
        out_specs=[
            pl.BlockSpec((1, S, VPAD), lambda t: (t, 0, 0)),     # per-segment logits+ratio
            const((MEM_SIZE, EMBED_DIM)),                        # final memory x
            const((MEM_SIZE, 1)),                                # final memory entropy
        ],
        out_shape=[
            jax.ShapeDtypeStruct((nseg, S, VPAD), jnp.float32),
            jax.ShapeDtypeStruct((MEM_SIZE, EMBED_DIM), jnp.float32),
            jax.ShapeDtypeStruct((MEM_SIZE, 1), jnp.float32),
        ],
        scratch_shapes=[
            pltpu.VMEM((MEM_SIZE, EMBED_DIM), jnp.float32),      # carried memory vectors
            pltpu.VMEM((MEM_SIZE, 1), jnp.float32),              # carried memory entropies
        ],
        compiler_params=pltpu.CompilerParams(
            dimension_semantics=("arbitrary",)),                 # sequential memory carry
    )(tok3, params["embed"], params["wa"], params["wb"],
      params["vec256"], params["vec64"], minx, mine)

    logits = out_pad[:, :, :VOCAB_SIZE]                          # (NSEG, S, V)
    ratios = out_pad[:, 0, VOCAB_SIZE]                           # (NSEG,)
    return logits, memx_out, meme_out[:, 0], ratios


def _pack_mem(mem_x, mem_ent):
    minx = jnp.zeros((MEM_SIZE, EMBED_DIM), jnp.float32)
    mine = jnp.full((MEM_SIZE, 1), ENT_SENTINEL, jnp.float32)
    init_len = 0
    if mem_x is not None:
        init_len = int(mem_x.shape[0])
        minx = minx.at[:init_len].set(mem_x.astype(jnp.float32))
        mine = mine.at[:init_len, 0].set(mem_ent.astype(jnp.float32))
    return minx, mine, init_len


def transformer_xl_forward(token_ids, mem_x, mem_ent, params):
    """Mirrors TransformerXLModel.forward for one segment. token_ids: (1, S), batch must be 1."""
    assert token_ids.shape[0] == 1
    minx, mine, init_len = _pack_mem(mem_x, mem_ent)
    logits, memx_out, meme_out, ratios = _run_segments(
        token_ids.astype(jnp.int32), minx, mine, params, init_len=init_len)
    final_len = min(init_len + token_ids.shape[1], MEM_SIZE)
    return logits, memx_out[:final_len], meme_out[:final_len], ratios[0]


def transformer_xl_forward_segments(token_ids, mem_x, mem_ent, params, seg_len):
    """Multi-segment hot path: one pallas_call, grid over segments, resident weights,
    in-kernel memory carry + top-k eviction. token_ids: (1, NSEG*seg_len)."""
    B, T = token_ids.shape
    assert B == 1 and T % seg_len == 0
    tokens = token_ids.reshape(T // seg_len, seg_len).astype(jnp.int32)
    minx, mine, init_len = _pack_mem(mem_x, mem_ent)
    logits, memx_out, meme_out, ratios = _run_segments(
        tokens, minx, mine, params, init_len=init_len)
    final_len = min(init_len + T, MEM_SIZE)
    return (logits.reshape(1, T, VOCAB_SIZE), memx_out[:final_len],
            meme_out[:final_len], ratios)


# ---------------- parameter construction (PyTorch layout -> packed kernel layout) --------

def init_raw_params(key):
    ks = jax.random.split(key, 10)
    E, V, H4 = EMBED_DIM, VOCAB_SIZE, FF_DIM
    s = 0.02

    def rnd(k, shape):
        return jax.random.normal(k, shape, jnp.float32) * s

    return {
        "embed": jax.random.normal(ks[0], (V, E), jnp.float32),
        "in_proj_w": rnd(ks[1], (3 * E, E)),     # nn.MultiheadAttention in_proj_weight
        "in_proj_b": rnd(ks[2], (3 * E,)),
        "out_proj_w": rnd(ks[3], (E, E)),
        "out_proj_b": rnd(ks[4], (E,)),
        "ln1_g": jnp.ones((E,), jnp.float32), "ln1_b": jnp.zeros((E,), jnp.float32),
        "ff1_w": rnd(ks[5], (H4, E)), "ff1_b": rnd(ks[6], (H4,)),
        "ff2_w": rnd(ks[7], (E, H4)), "ff2_b": rnd(ks[8], (E,)),
        "ln2_g": jnp.ones((E,), jnp.float32), "ln2_b": jnp.zeros((E,), jnp.float32),
        "out_w": rnd(ks[9], (V, E)), "out_b": jnp.zeros((V,), jnp.float32),
    }


def pack_params(raw):
    E, D, V = EMBED_DIM, HEAD_DIM, VOCAB_SIZE
    scale = 1.0 / math.sqrt(D)

    wq = raw["in_proj_w"][0:E].T
    wk = raw["in_proj_w"][E:2 * E].T
    wv = raw["in_proj_w"][2 * E:3 * E].T
    bq = raw["in_proj_b"][0:E]
    bk = raw["in_proj_b"][E:2 * E]
    bv = raw["in_proj_b"][2 * E:3 * E]
    wo = raw["out_proj_w"].T                      # (E, E), applied as x @ wo
    bo = raw["out_proj_b"]

    # fold the per-head V projection through out_proj rows, and 1/sqrt(D) into Q
    wvo = [wv[:, h * D:(h + 1) * D] @ wo[h * D:(h + 1) * D, :] for h in range(NUM_HEADS)]
    bvo = [bv[h * D:(h + 1) * D] @ wo[h * D:(h + 1) * D, :] for h in range(NUM_HEADS)]
    w_fused = jnp.concatenate([wq * scale, wk] + wvo, axis=1)               # (E, 4E)
    b_fused = jnp.concatenate([bq * scale, bk] + bvo, axis=0)               # (4E,)

    w1 = raw["ff1_w"].T                           # (E, 4E)
    w2 = raw["ff2_w"].T                           # (4E, E)
    wout = raw["out_w"].T                         # (E, V)

    w2_pad = jnp.zeros((FF_DIM, VPAD), jnp.float32).at[:, :E].set(w2)
    wout_pad = jnp.zeros((E, VPAD), jnp.float32).at[:, :V].set(wout)
    bout_pad = jnp.zeros((FF_DIM,), jnp.float32).at[:V].set(raw["out_b"])
    embed_pad = jnp.zeros((VROWS, E), jnp.float32).at[:V].set(raw["embed"])

    return {
        "embed": embed_pad.astype(jnp.bfloat16),
        "wa": jnp.concatenate([w_fused, w1], axis=0).astype(jnp.bfloat16),     # (2E, 4E)
        "wb": jnp.concatenate([w2_pad, wout_pad], axis=0).astype(jnp.bfloat16),  # (4E+E, VPAD)
        "vec256": jnp.stack([b_fused, raw["ff1_b"], bout_pad]),                # (3, 4E) f32
        "vec64": jnp.stack([bo, raw["ln1_g"], raw["ln1_b"],
                            raw["ff2_b"], raw["ln2_g"], raw["ln2_b"]]),        # (6, E) f32
    }


if __name__ == "__main__":
    key = jax.random.PRNGKey(0)
    k_param, k_tok, k_mem, k_ent, k_tok2 = jax.random.split(key, 5)

    params = pack_params(init_raw_params(k_param))

    S = 8  # segment length; batch = 1 (required by the reference memory-concat semantics)
    token_ids = jax.random.randint(k_tok, (1, S), 0, VOCAB_SIZE, dtype=jnp.int32)

    # (a) single segment, no memory yet (reference first call; append path)
    logits0, mem_x0, mem_ent0, ratio0 = transformer_xl_forward(token_ids, None, None, params)

    # (b) single segment with a full 20-slot memory (in-kernel top-k eviction path)
    mem_x = jax.random.normal(k_mem, (MEM_SIZE, EMBED_DIM), jnp.float32)
    mem_ent = jax.random.uniform(k_ent, (MEM_SIZE,), jnp.float32)
    logits1, mem_x1, mem_ent1, ratio1 = transformer_xl_forward(
        token_ids, mem_x, mem_ent, params)

    # (c) 4 segments in ONE pallas_call: resident weights, carried memory, in-kernel eviction
    NSEG = 4
    tok_long = jax.random.randint(k_tok2, (1, NSEG * S), 0, VOCAB_SIZE, dtype=jnp.int32)
    logits_m, mem_xm, mem_entm, ratios = transformer_xl_forward_segments(
        tok_long, None, None, params, seg_len=S)

    jax.block_until_ready((logits0, mem_x0, mem_ent0, ratio0,
                           logits1, mem_x1, mem_ent1, ratio1,
                           logits_m, mem_xm, mem_entm, ratios))

    assert logits0.shape == (1, S, VOCAB_SIZE)
    assert mem_x0.shape == (S, EMBED_DIM) and mem_ent0.shape == (S,)
    assert logits1.shape == (1, S, VOCAB_SIZE)
    assert mem_x1.shape == (MEM_SIZE, EMBED_DIM) and mem_ent1.shape == (MEM_SIZE,)
    assert logits_m.shape == (1, NSEG * S, VOCAB_SIZE)
    assert mem_xm.shape == (MEM_SIZE, EMBED_DIM) and mem_entm.shape == (MEM_SIZE,)
    assert ratios.shape == (NSEG,)
    assert bool(jnp.all(jnp.isfinite(logits0)))
    assert bool(jnp.all(jnp.isfinite(logits1)))
    assert bool(jnp.all(jnp.isfinite(logits_m)))
    assert bool(jnp.all(jnp.isfinite(mem_entm)))
    assert float(ratio0) == 1.0                      # no eviction on the first segment
    assert 0.0 < float(ratio1) <= 1.0 + 1e-5         # eviction keeps a proper fraction
    assert 0.0 < float(ratios[-1]) <= 1.0 + 1e-5

    print("KERNEL_OK")
</pallas_src>

<mosaic_0001>
module attributes {stable_mosaic.version = 11 : i64} {
  func.func @xl_segments_kernel(%arg0: i32, %arg1: memref<1x8x1xi32, #tpu.memory_space<vmem>>, %arg2: memref<64x64xbf16, #tpu.memory_space<vmem>>, %arg3: memref<128x256xbf16, #tpu.memory_space<vmem>>, %arg4: memref<320x128xbf16, #tpu.memory_space<vmem>>, %arg5: memref<3x256xf32, #tpu.memory_space<vmem>>, %arg6: memref<6x64xf32, #tpu.memory_space<vmem>>, %arg7: memref<20x64xf32, #tpu.memory_space<vmem>>, %arg8: memref<20x1xf32, #tpu.memory_space<vmem>>, %arg9: memref<1x8x128xf32, #tpu.memory_space<vmem>>, %arg10: memref<20x64xf32, #tpu.memory_space<vmem>>, %arg11: memref<20x1xf32, #tpu.memory_space<vmem>>, %arg12: memref<20x64xf32, #tpu.memory_space<vmem>>, %arg13: memref<20x1xf32, #tpu.memory_space<vmem>>) attributes {dimension_semantics = [#tpu.dimension_semantics<arbitrary>], iteration_bounds = array<i64: 1>, scalar_prefetch = 0 : i64, scratch_operands = 2 : i64, tpu.core_type = #tpu.core_type<tc>, window_params = [{transform_indices = @transform_0, window_bounds = array<i64: 1, 8, 1>}, {pipeline_mode = #tpu.pipeline_mode<synchronous>, transform_indices = @transform_1, window_bounds = array<i64: 64, 64>}, {pipeline_mode = #tpu.pipeline_mode<synchronous>, transform_indices = @transform_2, window_bounds = array<i64: 128, 256>}, {pipeline_mode = #tpu.pipeline_mode<synchronous>, transform_indices = @transform_3, window_bounds = array<i64: 320, 128>}, {pipeline_mode = #tpu.pipeline_mode<synchronous>, transform_indices = @transform_4, window_bounds = array<i64: 3, 256>}, {pipeline_mode = #tpu.pipeline_mode<synchronous>, transform_indices = @transform_5, window_bounds = array<i64: 6, 64>}, {pipeline_mode = #tpu.pipeline_mode<synchronous>, transform_indices = @transform_6, window_bounds = array<i64: 20, 64>}, {pipeline_mode = #tpu.pipeline_mode<synchronous>, transform_indices = @transform_7, window_bounds = array<i64: 20, 1>}, {transform_indices = @transform_8, window_bounds = array<i64: 1, 8, 128>}, {pipeline_mode = #tpu.pipeline_mode<synchronous>, transform_indices = @transform_9, window_bounds = array<i64: 20, 64>}, {pipeline_mode = #tpu.pipeline_mode<synchronous>, transform_indices = @transform_10, window_bounds = array<i64: 20, 1>}]} {
    %c0_i32 = arith.constant 0 : i32
    %0 = arith.cmpi eq, %arg0, %c0_i32 : i32
    %1 = arith.extui %0 : i1 to i32
    %c0_i32_0 = arith.constant 0 : i32
    %2 = arith.cmpi ne, %1, %c0_i32_0 : i32
    scf.if %2 {
      %c0_76 = arith.constant 0 : index
      %c0_77 = arith.constant 0 : index
      %220 = vector.load %arg7[%c0_76, %c0_77] : memref<20x64xf32, #tpu.memory_space<vmem>>, vector<20x64xf32>
      %c0_78 = arith.constant 0 : index
      %c0_79 = arith.constant 0 : index
      %221 = vector.load %arg12[%c0_78, %c0_79] : memref<20x64xf32, #tpu.memory_space<vmem>>, vector<20x64xf32>
      tpu.vector_store %arg12[%c0_78, %c0_79], %220 {strides = array<i32>} : memref<20x64xf32, #tpu.memory_space<vmem>>, vector<20x64xf32>,
      %c0_80 = arith.constant 0 : index
      %c0_81 = arith.constant 0 : index
      %222 = vector.load %arg8[%c0_80, %c0_81] : memref<20x1xf32, #tpu.memory_space<vmem>>, vector<20x1xf32>
      %c0_82 = arith.constant 0 : index
      %c0_83 = arith.constant 0 : index
      %223 = vector.load %arg13[%c0_82, %c0_83] : memref<20x1xf32, #tpu.memory_space<vmem>>, vector<20x1xf32>
      tpu.vector_store %arg13[%c0_82, %c0_83], %222 {strides = array<i32>} : memref<20x1xf32, #tpu.memory_space<vmem>>, vector<20x1xf32>,
    } else {
    }
    %c8_i32 = arith.constant 8 : i32
    %3 = arith.muli %arg0, %c8_i32 : i32
    %c0_i32_1 = arith.constant 0 : i32
    %4 = arith.addi %c0_i32_1, %3 : i32
    %c20_i32 = arith.constant 20 : i32
    %5 = arith.minsi %4, %c20_i32 : i32
    %c8_i32_2 = arith.constant 8 : i32
    %6 = arith.addi %c8_i32_2, %5 : i32
    %c0 = arith.constant 0 : index
    %c0_3 = arith.constant 0 : index
    %7 = vector.load %arg3[%c0, %c0_3] : memref<128x256xbf16, #tpu.memory_space<vmem>>, vector<64x256xbf16>
    %c64 = arith.constant 64 : index
    %c0_4 = arith.constant 0 : index
    %8 = vector.load %arg3[%c64, %c0_4] : memref<128x256xbf16, #tpu.memory_space<vmem>>, vector<64x256xbf16>
    %c0_5 = arith.constant 0 : index
    %c0_6 = arith.constant 0 : index
    %9 = vector.load %arg4[%c0_5, %c0_6] : memref<320x128xbf16, #tpu.memory_space<vmem>>, vector<256x128xbf16>
    %c256 = arith.constant 256 : index
    %c0_7 = arith.constant 0 : index
    %10 = vector.load %arg4[%c256, %c0_7] : memref<320x128xbf16, #tpu.memory_space<vmem>>, vector<64x128xbf16>
    %c0_8 = arith.constant 0 : index
    %c0_9 = arith.constant 0 : index
    %11 = vector.load %arg5[%c0_8, %c0_9] : memref<3x256xf32, #tpu.memory_space<vmem>>, vector<1x256xf32>
    %c1 = arith.constant 1 : index
    %c0_10 = arith.constant 0 : index
    %12 = vector.load %arg5[%c1, %c0_10] : memref<3x256xf32, #tpu.memory_space<vmem>>, vector<1x256xf32>
    %c2 = arith.constant 2 : index
    %c0_11 = arith.constant 0 : index
    %13 = vector.load %arg5[%c2, %c0_11] : memref<3x256xf32, #tpu.memory_space<vmem>>, vector<1x128xf32>
    %c0_12 = arith.constant 0 : index
    %c0_13 = arith.constant 0 : index
    %14 = vector.load %arg6[%c0_12, %c0_13] : memref<6x64xf32, #tpu.memory_space<vmem>>, vector<1x64xf32>
    %c1_14 = arith.constant 1 : index
    %c0_15 = arith.constant 0 : index
    %15 = vector.load %arg6[%c1_14, %c0_15] : memref<6x64xf32, #tpu.memory_space<vmem>>, vector<1x64xf32>
    %c2_16 = arith.constant 2 : index
    %c0_17 = arith.constant 0 : index
    %16 = vector.load %arg6[%c2_16, %c0_17] : memref<6x64xf32, #tpu.memory_space<vmem>>, vector<1x64xf32>
    %c3 = arith.constant 3 : index
    %c0_18 = arith.constant 0 : index
    %17 = vector.load %arg6[%c3, %c0_18] : memref<6x64xf32, #tpu.memory_space<vmem>>, vector<1x64xf32>
    %c4 = arith.constant 4 : index
    %c0_19 = arith.constant 0 : index
    %18 = vector.load %arg6[%c4, %c0_19] : memref<6x64xf32, #tpu.memory_space<vmem>>, vector<1x64xf32>
    %c5 = arith.constant 5 : index
    %c0_20 = arith.constant 0 : index
    %19 = vector.load %arg6[%c5, %c0_20] : memref<6x64xf32, #tpu.memory_space<vmem>>, vector<1x64xf32>
    %c0_21 = arith.constant 0 : index
    %c0_22 = arith.constant 0 : index
    %c0_23 = arith.constant 0 : index
    %20 = vector.load %arg1[%c0_21, %c0_22, %c0_23] : memref<1x8x1xi32, #tpu.memory_space<vmem>>, vector<1x8x1xi32>
    %21 = vector.shape_cast %20 : vector<1x8x1xi32> to vector<8x1xi32>
    %22 = tpu.iota {dimensions = array<i32: 1>} : vector<8x64xi32>
    %23 = vector.broadcast %21 : vector<8x1xi32> to vector<8x64xi32>
    %24 = arith.cmpi eq, %23, %22 : vector<8x64xi32>
    %25 = arith.extui %24 : vector<8x64xi1> to vector<8x64xi32>
    %26 = arith.sitofp %25 : vector<8x64xi32> to vector<8x64xf32>
    %27 = arith.truncf %26 : vector<8x64xf32> to vector<8x64xbf16>
    %c0_24 = arith.constant 0 : index
    %c0_25 = arith.constant 0 : index
    %28 = vector.load %arg2[%c0_24, %c0_25] : memref<64x64xbf16, #tpu.memory_space<vmem>>, vector<64x64xbf16>
    %cst = arith.constant dense<0.000000e+00> : vector<8x64xf32>
    %29 = tpu.matmul %27, %28, %cst {dimension_numbers = #tpu.dot_dimension_numbers<[1], [0], [0], [1], [0, 0, 1, 1], [], []>} : vector<8x64xbf16>, vector<64x64xbf16>, vector<8x64xf32> -> vector<8x64xf32>
    %c0_26 = arith.constant 0 : index
    %c0_27 = arith.constant 0 : index
    %30 = vector.load %arg12[%c0_26, %c0_27] : memref<20x64xf32, #tpu.memory_space<vmem>>, vector<20x64xf32>
    %31 = tpu.concatenate %29, %30 in 0 : vector<8x64xf32>, vector<20x64xf32> -> vector<28x64xf32>
    %32 = tpu.iota {dimensions = array<i32: 1>} : vector<8x28xi32>
    %33 = vector.broadcast %6 : i32 to vector<8x28xi32>
    %34 = arith.cmpi slt, %32, %33 : vector<8x28xi32>
    %35 = arith.truncf %31 : vector<28x64xf32> to vector<28x64xbf16>
    %cst_28 = arith.constant dense<0.000000e+00> : vector<28x256xf32>
    %36 = tpu.matmul %35, %7, %cst_28 {dimension_numbers = #tpu.dot_dimension_numbers<[1], [0], [0], [1], [0, 0, 1, 1], [], []>} : vector<28x64xbf16>, vector<64x256xbf16>, vector<28x256xf32> -> vector<28x256xf32>
    %37 = vector.broadcast %11 : vector<1x256xf32> to vector<28x256xf32>
    %38 = arith.addf %36, %37 : vector<28x256xf32>
    %39 = vector.extract_strided_slice %38 {offsets = [0, 0], sizes = [8, 32], strides = [1, 1]} : vector<28x256xf32> to vector<8x32xf32>
    %40 = vector.extract_strided_slice %38 {offsets = [0, 64], sizes = [28, 32], strides = [1, 1]} : vector<28x256xf32> to vector<28x32xf32>
    %cst_29 = arith.constant dense<0.000000e+00> : vector<8x28xf32>
    %41 = tpu.matmul %39, %40, %cst_29 {dimension_numbers = #tpu.dot_dimension_numbers<[1], [1], [0], [0], [0, 0, 1, 0], [], []>} : vector<8x32xf32>, vector<28x32xf32>, vector<8x28xf32> -> vector<8x28xf32>
    %cst_30 = arith.constant -1.000000e+30 : f32
    %42 = vector.broadcast %cst_30 : f32 to vector<8x28xf32>
    %43 = arith.select %34, %41, %42 : vector<8x28xi1>, vector<8x28xf32>
    %cst_31 = arith.constant dense<0xFF800000> : vector<8xf32>
    %44 = vector.multi_reduction <maximumf>, %43, %cst_31 [1] : vector<8x28xf32> to vector<8xf32>
    %45 = vector.shape_cast %44 : vector<8xf32> to vector<8x1xf32>
    %46 = vector.broadcast %45 : vector<8x1xf32> to vector<8x28xf32>
    %47 = arith.subf %43, %46 : vector<8x28xf32>
    %48 = math.exp %47 : vector<8x28xf32>
    %cst_32 = arith.constant dense<0.000000e+00> : vector<8xf32>
    %49 = vector.multi_reduction <add>, %48, %cst_32 [1] : vector<8x28xf32> to vector<8xf32>
    %50 = vector.shape_cast %49 : vector<8xf32> to vector<8x1xf32>
    %51 = tpu.reciprocal %50 {approx = true} : vector<8x1xf32> -> vector<8x1xf32>
    %52 = vector.broadcast %51 : vector<8x1xf32> to vector<8x28xf32>
    %53 = arith.mulf %48, %52 : vector<8x28xf32>
    %54 = vector.extract_strided_slice %38 {offsets = [0, 32], sizes = [8, 32], strides = [1, 1]} : vector<28x256xf32> to vector<8x32xf32>
    %55 = vector.extract_strided_slice %38 {offsets = [0, 96], sizes = [28, 32], strides = [1, 1]} : vector<28x256xf32> to vector<28x32xf32>
    %cst_33 = arith.constant dense<0.000000e+00> : vector<8x28xf32>
    %56 = tpu.matmul %54, %55, %cst_33 {dimension_numbers = #tpu.dot_dimension_numbers<[1], [1], [0], [0], [0, 0, 1, 0], [], []>} : vector<8x32xf32>, vector<28x32xf32>, vector<8x28xf32> -> vector<8x28xf32>
    %cst_34 = arith.constant -1.000000e+30 : f32
    %57 = vector.broadcast %cst_34 : f32 to vector<8x28xf32>
    %58 = arith.select %34, %56, %57 : vector<8x28xi1>, vector<8x28xf32>
    %cst_35 = arith.constant dense<0xFF800000> : vector<8xf32>
    %59 = vector.multi_reduction <maximumf>, %58, %cst_35 [1] : vector<8x28xf32> to vector<8xf32>
    %60 = vector.shape_cast %59 : vector<8xf32> to vector<8x1xf32>
    %61 = vector.broadcast %60 : vector<8x1xf32> to vector<8x28xf32>
    %62 = arith.subf %58, %61 : vector<8x28xf32>
    %63 = math.exp %62 : vector<8x28xf32>
    %cst_36 = arith.constant dense<0.000000e+00> : vector<8xf32>
    %64 = vector.multi_reduction <add>, %63, %cst_36 [1] : vector<8x28xf32> to vector<8xf32>
    %65 = vector.shape_cast %64 : vector<8xf32> to vector<8x1xf32>
    %66 = tpu.reciprocal %65 {approx = true} : vector<8x1xf32> -> vector<8x1xf32>
    %67 = vector.broadcast %66 : vector<8x1xf32> to vector<8x28xf32>
    %68 = arith.mulf %63, %67 : vector<8x28xf32>
    %69 = tpu.concatenate %53, %68 in 1 : vector<8x28xf32>, vector<8x28xf32> -> vector<8x56xf32>
    %70 = vector.extract_strided_slice %38 {offsets = [0, 128], sizes = [28, 64], strides = [1, 1]} : vector<28x256xf32> to vector<28x64xf32>
    %71 = vector.extract_strided_slice %38 {offsets = [0, 192], sizes = [28, 64], strides = [1, 1]} : vector<28x256xf32> to vector<28x64xf32>
    %72 = tpu.concatenate %70, %71 in 0 : vector<28x64xf32>, vector<28x64xf32> -> vector<56x64xf32>
    %cst_37 = arith.constant dense<0.000000e+00> : vector<8x64xf32>
    %73 = tpu.matmul %69, %72, %cst_37 {dimension_numbers = #tpu.dot_dimension_numbers<[1], [0], [0], [1], [0, 0, 1, 1], [], []>} : vector<8x56xf32>, vector<56x64xf32>, vector<8x64xf32> -> vector<8x64xf32>
    %74 = vector.broadcast %14 : vector<1x64xf32> to vector<8x64xf32>
    %75 = arith.addf %73, %74 : vector<8x64xf32>
    %76 = arith.addf %53, %68 : vector<8x28xf32>
    %cst_38 = arith.constant 5.000000e-01 : f32
    %77 = vector.broadcast %cst_38 : f32 to vector<8x28xf32>
    %78 = arith.mulf %76, %77 : vector<8x28xf32>
    %cst_39 = arith.constant 1.000000e-10 : f32
    %79 = vector.broadcast %cst_39 : f32 to vector<8x28xf32>
    %80 = arith.addf %78, %79 : vector<8x28xf32>
    %81 = math.log %80 : vector<8x28xf32>
    %82 = arith.mulf %78, %81 : vector<8x28xf32>
    %cst_40 = arith.constant dense<0.000000e+00> : vector<8xf32>
    %83 = vector.multi_reduction <add>, %82, %cst_40 [1] : vector<8x28xf32> to vector<8xf32>
    %84 = vector.shape_cast %83 : vector<8xf32> to vector<8x1xf32>
    %cst_41 = arith.constant 0.000000e+00 : f32
    %85 = vector.broadcast %cst_41 : f32 to vector<8x1xf32>
    %86 = arith.subf %85, %84 : vector<8x1xf32>
    %87 = arith.addf %29, %75 : vector<8x64xf32>
    %cst_42 = arith.constant dense<0.000000e+00> : vector<8xf32>
    %88 = vector.multi_reduction <add>, %87, %cst_42 [1] : vector<8x64xf32> to vector<8xf32>
    %89 = vector.shape_cast %88 : vector<8xf32> to vector<8x1xf32>
    %cst_43 = arith.constant 6.400000e+01 : f32
    %90 = vector.broadcast %cst_43 : f32 to vector<8x1xf32>
    %91 = arith.divf %89, %90 : vector<8x1xf32>
    %92 = vector.broadcast %91 : vector<8x1xf32> to vector<8x64xf32>
    %93 = arith.subf %87, %92 : vector<8x64xf32>
    %94 = arith.mulf %93, %93 : vector<8x64xf32>
    %cst_44 = arith.constant dense<0.000000e+00> : vector<8xf32>
    %95 = vector.multi_reduction <add>, %94, %cst_44 [1] : vector<8x64xf32> to vector<8xf32>
    %96 = vector.shape_cast %95 : vector<8xf32> to vector<8x1xf32>
    %cst_45 = arith.constant 6.400000e+01 : f32
    %97 = vector.broadcast %cst_45 : f32 to vector<8x1xf32>
    %98 = arith.divf %96, %97 : vector<8x1xf32>
    %99 = vector.broadcast %91 : vector<8x1xf32> to vector<8x64xf32>
    %100 = arith.subf %87, %99 : vector<8x64xf32>
    %cst_46 = arith.constant 9.99999974E-6 : f32
    %101 = vector.broadcast %cst_46 : f32 to vector<8x1xf32>
    %102 = arith.addf %98, %101 : vector<8x1xf32>
    %103 = math.rsqrt %102 : vector<8x1xf32>
    %104 = vector.broadcast %103 : vector<8x1xf32> to vector<8x64xf32>
    %105 = arith.mulf %100, %104 : vector<8x64xf32>
    %106 = vector.broadcast %15 : vector<1x64xf32> to vector<8x64xf32>
    %107 = arith.mulf %105, %106 : vector<8x64xf32>
    %108 = vector.broadcast %16 : vector<1x64xf32> to vector<8x64xf32>
    %109 = arith.addf %107, %108 : vector<8x64xf32>
    %110 = arith.truncf %109 : vector<8x64xf32> to vector<8x64xbf16>
    %cst_47 = arith.constant dense<0.000000e+00> : vector<8x256xf32>
    %111 = tpu.matmul %110, %8, %cst_47 {dimension_numbers = #tpu.dot_dimension_numbers<[1], [0], [0], [1], [0, 0, 1, 1], [], []>} : vector<8x64xbf16>, vector<64x256xbf16>, vector<8x256xf32> -> vector<8x256xf32>
    %112 = vector.broadcast %12 : vector<1x256xf32> to vector<8x256xf32>
    %113 = arith.addf %111, %112 : vector<8x256xf32>
    %cst_48 = arith.constant 0.000000e+00 : f32
    %114 = vector.broadcast %cst_48 : f32 to vector<8x256xf32>
    %115 = arith.maximumf %113, %114 : vector<8x256xf32>
    %116 = arith.truncf %115 : vector<8x256xf32> to vector<8x256xbf16>
    %cst_49 = arith.constant dense<0.000000e+00> : vector<8x128xf32>
    %117 = tpu.matmul %116, %9, %cst_49 {dimension_numbers = #tpu.dot_dimension_numbers<[1], [0], [0], [1], [0, 0, 1, 1], [], []>} : vector<8x256xbf16>, vector<256x128xbf16>, vector<8x128xf32> -> vector<8x128xf32>
    %118 = vector.extract_strided_slice %117 {offsets = [0, 0], sizes = [8, 64], strides = [1, 1]} : vector<8x128xf32> to vector<8x64xf32>
    %119 = vector.broadcast %17 : vector<1x64xf32> to vector<8x64xf32>
    %120 = arith.addf %118, %119 : vector<8x64xf32>
    %121 = arith.addf %109, %120 : vector<8x64xf32>
    %cst_50 = arith.constant dense<0.000000e+00> : vector<8xf32>
    %122 = vector.multi_reduction <add>, %121, %cst_50 [1] : vector<8x64xf32> to vector<8xf32>
    %123 = vector.shape_cast %122 : vector<8xf32> to vector<8x1xf32>
    %cst_51 = arith.constant 6.400000e+01 : f32
    %124 = vector.broadcast %cst_51 : f32 to vector<8x1xf32>
    %125 = arith.divf %123, %124 : vector<8x1xf32>
    %126 = vector.broadcast %125 : vector<8x1xf32> to vector<8x64xf32>
    %127 = arith.subf %121, %126 : vector<8x64xf32>
    %128 = arith.mulf %127, %127 : vector<8x64xf32>
    %cst_52 = arith.constant dense<0.000000e+00> : vector<8xf32>
    %129 = vector.multi_reduction <add>, %128, %cst_52 [1] : vector<8x64xf32> to vector<8xf32>
    %130 = vector.shape_cast %129 : vector<8xf32> to vector<8x1xf32>
    %cst_53 = arith.constant 6.400000e+01 : f32
    %131 = vector.broadcast %cst_53 : f32 to vector<8x1xf32>
    %132 = arith.divf %130, %131 : vector<8x1xf32>
    %133 = vector.broadcast %125 : vector<8x1xf32> to vector<8x64xf32>
    %134 = arith.subf %121, %133 : vector<8x64xf32>
    %cst_54 = arith.constant 9.99999974E-6 : f32
    %135 = vector.broadcast %cst_54 : f32 to vector<8x1xf32>
    %136 = arith.addf %132, %135 : vector<8x1xf32>
    %137 = math.rsqrt %136 : vector<8x1xf32>
    %138 = vector.broadcast %137 : vector<8x1xf32> to vector<8x64xf32>
    %139 = arith.mulf %134, %138 : vector<8x64xf32>
    %140 = vector.broadcast %18 : vector<1x64xf32> to vector<8x64xf32>
    %141 = arith.mulf %139, %140 : vector<8x64xf32>
    %142 = vector.broadcast %19 : vector<1x64xf32> to vector<8x64xf32>
    %143 = arith.addf %141, %142 : vector<8x64xf32>
    %144 = arith.truncf %143 : vector<8x64xf32> to vector<8x64xbf16>
    %cst_55 = arith.constant dense<0.000000e+00> : vector<8x128xf32>
    %145 = tpu.matmul %144, %10, %cst_55 {dimension_numbers = #tpu.dot_dimension_numbers<[1], [0], [0], [1], [0, 0, 1, 1], [], []>} : vector<8x64xbf16>, vector<64x128xbf16>, vector<8x128xf32> -> vector<8x128xf32>
    %146 = vector.broadcast %13 : vector<1x128xf32> to vector<8x128xf32>
    %147 = arith.addf %145, %146 : vector<8x128xf32>
    %c0_56 = arith.constant 0 : index
    %c0_57 = arith.constant 0 : index
    %148 = vector.load %arg13[%c0_56, %c0_57] : memref<20x1xf32, #tpu.memory_space<vmem>>, vector<20x1xf32>
    %149 = tpu.concatenate %86, %148 in 0 : vector<8x1xf32>, vector<20x1xf32> -> vector<28x1xf32>
    %150 = tpu.iota {dimensions = array<i32: 0>} : vector<28x1xi32>
    %151 = vector.broadcast %6 : i32 to vector<28x1xi32>
    %152 = arith.cmpi slt, %150, %151 : vector<28x1xi32>
    %cst_58 = arith.constant -1.000000e+00 : f32
    %153 = vector.broadcast %cst_58 : f32 to vector<28x1xf32>
    %154 = arith.select %152, %149, %153 : vector<28x1xi1>, vector<28x1xf32>
    %155 = tpu.iota {dimensions = array<i32: 0>} : vector<28x28xi32>
    %156 = tpu.iota {dimensions = array<i32: 1>} : vector<28x28xi32>
    %157 = arith.cmpi eq, %155, %156 : vector<28x28xi32>
    %158 = arith.extui %157 : vector<28x28xi1> to vector<28x28xi32>
    %159 = arith.sitofp %158 : vector<28x28xi32> to vector<28x28xf32>
    %160 = vector.broadcast %154 : vector<28x1xf32> to vector<28x28xf32>
    %161 = arith.mulf %160, %159 : vector<28x28xf32>
    %cst_59 = arith.constant dense<0.000000e+00> : vector<28xf32>
    %162 = vector.multi_reduction <add>, %161, %cst_59 [0] : vector<28x28xf32> to vector<28xf32>
    %163 = vector.shape_cast %162 : vector<28xf32> to vector<1x28xf32>
    %164 = tpu.iota {dimensions = array<i32: 0>} : vector<28x28xi32>
    %165 = tpu.iota {dimensions = array<i32: 1>} : vector<28x28xi32>
    %166 = vector.broadcast %154 : vector<28x1xf32> to vector<28x28xf32>
    %167 = vector.broadcast %163 : vector<1x28xf32> to vector<28x28xf32>
    %168 = arith.cmpf ogt, %166, %167 : vector<28x28xf32>
    %169 = vector.broadcast %154 : vector<28x1xf32> to vector<28x28xf32>
    %170 = vector.broadcast %163 : vector<1x28xf32> to vector<28x28xf32>
    %171 = arith.cmpf oeq, %169, %170 : vector<28x28xf32>
    %172 = arith.cmpi slt, %164, %165 : vector<28x28xi32>
    %173 = arith.andi %171, %172 : vector<28x28xi1>
    %174 = arith.ori %168, %173 : vector<28x28xi1>
    %175 = arith.extui %174 : vector<28x28xi1> to vector<28x28xi32>
    %176 = arith.sitofp %175 : vector<28x28xi32> to vector<28x28xf32>
    %cst_60 = arith.constant dense<0.000000e+00> : vector<28xf32>
    %177 = vector.multi_reduction <add>, %176, %cst_60 [0] : vector<28x28xf32> to vector<28xf32>
    %178 = vector.shape_cast %177 : vector<28xf32> to vector<1x28xf32>
    %179 = arith.fptosi %178 : vector<1x28xf32> to vector<1x28xi32>
    %180 = tpu.iota {dimensions = array<i32: 0>} : vector<20x28xi32>
    %181 = vector.broadcast %179 : vector<1x28xi32> to vector<20x28xi32>
    %182 = arith.cmpi eq, %181, %180 : vector<20x28xi32>
    %183 = arith.extui %182 : vector<20x28xi1> to vector<20x28xi32>
    %184 = arith.sitofp %183 : vector<20x28xi32> to vector<20x28xf32>
    %cst_61 = arith.constant dense<0.000000e+00> : vector<20x64xf32>
    %185 = tpu.matmul %184, %31, %cst_61 {dimension_numbers = #tpu.dot_dimension_numbers<[1], [0], [0], [1], [0, 0, 1, 1], [], []>} : vector<20x28xf32>, vector<28x64xf32>, vector<20x64xf32> -> vector<20x64xf32>
    %186 = vector.broadcast %163 : vector<1x28xf32> to vector<20x28xf32>
    %187 = arith.mulf %184, %186 : vector<20x28xf32>
    %cst_62 = arith.constant dense<0.000000e+00> : vector<20xf32>
    %188 = vector.multi_reduction <add>, %187, %cst_62 [1] : vector<20x28xf32> to vector<20xf32>
    %189 = vector.shape_cast %188 : vector<20xf32> to vector<20x1xf32>
    %190 = vector.shape_cast %189 : vector<20x1xf32> to vector<1x20x1xf32>
    %cst_63 = arith.constant dense<0.000000e+00> : vector<1xf32>
    %191 = vector.multi_reduction <add>, %190, %cst_63 [1, 2] : vector<1x20x1xf32> to vector<1xf32>
    %192 = vector.shape_cast %191 : vector<1xf32> to vector<1x1x1xf32>
    %193 = vector.extract %192[0, 0, 0] : f32 from vector<1x1x1xf32>
    %cst_64 = arith.constant 0.000000e+00 : f32
    %194 = vector.broadcast %cst_64 : f32 to vector<28x1xf32>
    %195 = arith.select %152, %149, %194 : vector<28x1xi1>, vector<28x1xf32>
    %196 = vector.shape_cast %195 : vector<28x1xf32> to vector<1x28x1xf32>
    %cst_65 = arith.constant dense<0.000000e+00> : vector<1xf32>
    %197 = vector.multi_reduction <add>, %196, %cst_65 [1, 2] : vector<1x28x1xf32> to vector<1xf32>
    %198 = vector.shape_cast %197 : vector<1xf32> to vector<1x1x1xf32>
    %199 = vector.extract %198[0, 0, 0] : f32 from vector<1x1x1xf32>
    %cst_66 = arith.constant 1.000000e-10 : f32
    %200 = arith.addf %199, %cst_66 : f32
    %c20_i32_67 = arith.constant 20 : i32
    %201 = arith.cmpi sgt, %6, %c20_i32_67 : i32
    %202 = arith.divf %193, %200 : f32
    %cst_68 = arith.constant 1.000000e+00 : f32
    %203 = arith.select %201, %202, %cst_68 : f32
    %204 = arith.extui %201 : i1 to i32
    %c0_i32_69 = arith.constant 0 : i32
    %205 = arith.cmpi ne, %204, %c0_i32_69 : i32
    scf.if %205 {
      %c0_76 = arith.constant 0 : index
      %c0_77 = arith.constant 0 : index
      %220 = vector.load %arg12[%c0_76, %c0_77] : memref<20x64xf32, #tpu.memory_space<vmem>>, vector<20x64xf32>
      tpu.vector_store %arg12[%c0_76, %c0_77], %185 {strides = array<i32>} : memref<20x64xf32, #tpu.memory_space<vmem>>, vector<20x64xf32>,
      %c0_78 = arith.constant 0 : index
      %c0_79 = arith.constant 0 : index
      %221 = vector.load %arg13[%c0_78, %c0_79] : memref<20x1xf32, #tpu.memory_space<vmem>>, vector<20x1xf32>
      tpu.vector_store %arg13[%c0_78, %c0_79], %189 {strides = array<i32>} : memref<20x1xf32, #tpu.memory_space<vmem>>, vector<20x1xf32>,
    } else {
    }
    %true = arith.constant true
    %206 = arith.xori %201, %true : i1
    %207 = arith.extui %206 : i1 to i32
    %c0_i32_70 = arith.constant 0 : i32
    %208 = arith.cmpi ne, %207, %c0_i32_70 : i32
    scf.if %208 {
      %220 = arith.index_cast %5 : i32 to index
      %c0_76 = arith.constant 0 : index
      %221 = vector.load %arg12[%220, %c0_76] : memref<20x64xf32, #tpu.memory_space<vmem>>, vector<8x64xf32>
      tpu.vector_store %arg12[%220, %c0_76], %29 {strides = array<i32>} : memref<20x64xf32, #tpu.memory_space<vmem>>, vector<8x64xf32>,
      %222 = arith.index_cast %5 : i32 to index
      %c0_77 = arith.constant 0 : index
      %223 = vector.load %arg13[%222, %c0_77] : memref<20x1xf32, #tpu.memory_space<vmem>>, vector<8x1xf32>
      tpu.vector_store %arg13[%222, %c0_77], %86 {strides = array<i32>} : memref<20x1xf32, #tpu.memory_space<vmem>>, vector<8x1xf32>,
    } else {
    }
    %209 = tpu.iota {dimensions = array<i32: 1>} : vector<8x128xi32>
    %c50_i32 = arith.constant 50 : i32
    %210 = vector.broadcast %c50_i32 : i32 to vector<8x128xi32>
    %211 = arith.cmpi eq, %209, %210 : vector<8x128xi32>
    %212 = vector.broadcast %203 : f32 to vector<8x128xf32>
    %213 = arith.select %211, %212, %147 : vector<8x128xi1>, vector<8x128xf32>
    %c0_71 = arith.constant 0 : index
    %c0_72 = arith.constant 0 : index
    %c0_73 = arith.constant 0 : index
    %214 = vector.load %arg9[%c0_71, %c0_72, %c0_73] : memref<1x8x128xf32, #tpu.memory_space<vmem>>, vector<1x8x128xf32>
    %215 = vector.shape_cast %214 : vector<1x8x128xf32> to vector<8x128xf32>
    %216 = vector.shape_cast %213 : vector<8x128xf32> to vector<1x8x128xf32>
    tpu.vector_store %arg9[%c0_71, %c0_72, %c0_73], %216 {strides = array<i32>} : memref<1x8x128xf32, #tpu.memory_space<vmem>>, vector<1x8x128xf32>,
    %c0_i32_74 = arith.constant 0 : i32
    %217 = arith.cmpi eq, %arg0, %c0_i32_74 : i32
    %218 = arith.extui %217 : i1 to i32
    %c0_i32_75 = arith.constant 0 : i32
    %219 = arith.cmpi ne, %218, %c0_i32_75 : i32
    scf.if %219 {
      %c0_76 = arith.constant 0 : index
      %c0_77 = arith.constant 0 : index
      %220 = vector.load %arg12[%c0_76, %c0_77] : memref<20x64xf32, #tpu.memory_space<vmem>>, vector<20x64xf32>
      %c0_78 = arith.constant 0 : index
      %c0_79 = arith.constant 0 : index
      %221 = vector.load %arg10[%c0_78, %c0_79] : memref<20x64xf32, #tpu.memory_space<vmem>>, vector<20x64xf32>
      tpu.vector_store %arg10[%c0_78, %c0_79], %220 {strides = array<i32>} : memref<20x64xf32, #tpu.memory_space<vmem>>, vector<20x64xf32>,
      %c0_80 = arith.constant 0 : index
      %c0_81 = arith.constant 0 : index
      %222 = vector.load %arg13[%c0_80, %c0_81] : memref<20x1xf32, #tpu.memory_space<vmem>>, vector<20x1xf32>
      %c0_82 = arith.constant 0 : index
      %c0_83 = arith.constant 0 : index
      %223 = vector.load %arg11[%c0_82, %c0_83] : memref<20x1xf32, #tpu.memory_space<vmem>>, vector<20x1xf32>
      tpu.vector_store %arg11[%c0_82, %c0_83], %222 {strides = array<i32>} : memref<20x1xf32, #tpu.memory_space<vmem>>, vector<20x1xf32>,
    } else {
    }
    return
  }
  func.func @transform_0(%arg0: i32) -> (i32, i32, i32) {
    %c0_i32 = arith.constant 0 : i32
    %c0_i32_0 = arith.constant 0 : i32
    %c0_i32_1 = arith.constant 0 : i32
    return %arg0, %c0_i32, %c0_i32_0 : i32, i32, i32
  }
  func.func @transform_1(%arg0: i32) -> (i32, i32) {
    %c0_i32 = arith.constant 0 : i32
    %c0_i32_0 = arith.constant 0 : i32
    %c0_i32_1 = arith.constant 0 : i32
    return %c0_i32, %c0_i32_0 : i32, i32
  }
  func.func @transform_2(%arg0: i32) -> (i32, i32) {
    %c0_i32 = arith.constant 0 : i32
    %c0_i32_0 = arith.constant 0 : i32
    %c0_i32_1 = arith.constant 0 : i32
    return %c0_i32, %c0_i32_0 : i32, i32
  }
  func.func @transform_3(%arg0: i32) -> (i32, i32) {
    %c0_i32 = arith.constant 0 : i32
    %c0_i32_0 = arith.constant 0 : i32
    %c0_i32_1 = arith.constant 0 : i32
    return %c0_i32, %c0_i32_0 : i32, i32
  }
  func.func @transform_4(%arg0: i32) -> (i32, i32) {
    %c0_i32 = arith.constant 0 : i32
    %c0_i32_0 = arith.constant 0 : i32
    %c0_i32_1 = arith.constant 0 : i32
    return %c0_i32, %c0_i32_0 : i32, i32
  }
  func.func @transform_5(%arg0: i32) -> (i32, i32) {
    %c0_i32 = arith.constant 0 : i32
    %c0_i32_0 = arith.constant 0 : i32
    %c0_i32_1 = arith.constant 0 : i32
    return %c0_i32, %c0_i32_0 : i32, i32
  }
  func.func @transform_6(%arg0: i32) -> (i32, i32) {
    %c0_i32 = arith.constant 0 : i32
    %c0_i32_0 = arith.constant 0 : i32
    %c0_i32_1 = arith.constant 0 : i32
    return %c0_i32, %c0_i32_0 : i32, i32
  }
  func.func @transform_7(%arg0: i32) -> (i32, i32) {
    %c0_i32 = arith.constant 0 : i32
    %c0_i32_0 = arith.constant 0 : i32
    %c0_i32_1 = arith.constant 0 : i32
    return %c0_i32, %c0_i32_0 : i32, i32
  }
  func.func @transform_8(%arg0: i32) -> (i32, i32, i32) {
    %c0_i32 = arith.constant 0 : i32
    %c0_i32_0 = arith.constant 0 : i32
    %c0_i32_1 = arith.constant 0 : i32
    return %arg0, %c0_i32, %c0_i32_0 : i32, i32, i32
  }
  func.func @transform_9(%arg0: i32) -> (i32, i32) {
    %c0_i32 = arith.constant 0 : i32
    %c0_i32_0 = arith.constant 0 : i32
    %c0_i32_1 = arith.constant 0 : i32
    return %c0_i32, %c0_i32_0 : i32, i32
  }
  func.func @transform_10(%arg0: i32) -> (i32, i32) {
    %c0_i32 = arith.constant 0 : i32
    %c0_i32_0 = arith.constant 0 : i32
    %c0_i32_1 = arith.constant 0 : i32
    return %c0_i32, %c0_i32_0 : i32, i32
  }
}

</mosaic_0001>

<bundles_post_ra>
// kernel: _run_segments.1
= control target key start
LH: loop header
LB: loop body
LE: loop exit
PB: predicated region body
PF: predicated region fallthrough
CT: control target
= control target key end

     0   :  { %16 = vsyncpa [#allocation5], 0  ;;  %s2165_s0 = inlined_call_operand.vmem [shape: s32[1,8,1], index: 0, kind: input, shape index: {}]   ;;  %s2166_s1 = inlined_call_operand.vmem [shape: bf16[64,64], index: 1, kind: input, shape index: {}]   ;;  %s2167_s2 = inlined_call_operand.hbm [shape: bf16[128,256], index: 2, kind: input, shape index: {}]   ;;  %s2168_s3 = inlined_call_operand.hbm [shape: bf16[320,128], index: 3, kind: input, shape index: {}]   ;;  %s2169_s4 = inlined_call_operand.vmem [shape: f32[3,256], index: 4, kind: input, shape index: {}]   ;;  %s2170_s5 = inlined_call_operand.hbm [shape: f32[6,64], index: 5, kind: input, shape index: {}]   ;;  %s2171_s6 = inlined_call_operand.hbm [shape: f32[20,64], index: 6, kind: input, shape index: {}]   ;;  %s2172_s7 = inlined_call_operand.vmem [shape: f32[20,1], index: 7, kind: input, shape index: {}]   ;;  %s2173_s8 = inlined_call_operand.vmem [shape: f32[1,8,128], index: 8, kind: output, shape index: {0}]   ;;  %s2174_s9 = inlined_call_operand.hbm [shape: f32[20,64], index: 9, kind: output, shape index: {1}]   ;;  %s2175_s10 = inlined_call_operand.vmem [shape: f32[20,1], index: 10, kind: output, shape index: {2}]  }
   0x1   :  { %17 = vsyncpa [#allocation8], 0 }
   0x2   :  { %18 = vsyncpa [#allocation11], 0 }
   0x3   :  { %19 = vsyncpa [#allocation6], 0  ;;  %s1810_s13 = smov [#allocation7]  }
   0x4   :  { %s41_s14 = sshll.u32 %s1810_s13, 4  ;;  %s42_s14 = int_to_ptr.vmem [resolvable:$true] %s41_s14 }
   0x5   :  { %s1710_s15 = scalar_lea.vmem %s42_s14, 2560  ;;  %p1715_p1 = scmp.lt.s32.totalorder %s42_s14, %s42_s14 }
   0x6   :  { %p1711_p0 = scmp.ne.s32.totalorder %s42_s14, %s1710_s15  ;;  %p1716_p2 = scmp.lt.s32.totalorder %s1710_s15, %s1710_s15 }
   0x8   :  { %p1717_p3 = por %p1716_p2, %p1715_p1 }
   0xa   :  { %p1718_p4 = pnand %p1717_p3, %p1711_p0 }
   0xc   :  { %1721 = shalt.err (!%p1718_p4)
}
   0xd   :  { %s1811_s16 = smov 64   ;;  %s1812_s17 = smov 4  }
   0xe   :  { %47 = dma.hbm_to_vmem [thread:$0]  %s2168_s3, 2560, %s42_s14, [#allocation8], %s1811_s16, %s1811_s16, %s1812_s17  }
   0xf   :  { %s1813_s20 = smov [#allocation4]  }
  0x10   :  { %s29_s21 = sshll.u32 %s1813_s20, 4  ;;  %s30_s21 = int_to_ptr.vmem [resolvable:$true] %s29_s21 }
  0x11   :  { %s1730_s22 = scalar_lea.vmem %s30_s21, 2048  ;;  %p1735_p6 = scmp.lt.s32.totalorder %s30_s21, %s30_s21 }
  0x12   :  { %p1731_p5 = scmp.ne.s32.totalorder %s30_s21, %s1730_s22  ;;  %p1736_p7 = scmp.lt.s32.totalorder %s1730_s22, %s1730_s22 }
  0x14   :  { %p1737_p8 = por %p1736_p7, %p1735_p6 }
  0x16   :  { %p1738_p9 = pnand %p1737_p8, %p1731_p5 }
  0x18   :  { %1741 = shalt.err (!%p1738_p9)
}
  0x19   :  { %s1814_s23 = smov 128   ;;  %s1815_s24 = smov 8  }
  0x1a   :  { %35 = dma.hbm_to_vmem [thread:$0]  %s2167_s2, 2048, %s30_s21, [#allocation5], %s1814_s23, %s1814_s23, %s1815_s24  }
  0x1b   :  { %s1816_s3 = smov [#allocation9]   ;;  %s1817_s28 = smov [#allocation10]  }
  0x1c   :  { %s56_s27 = sshll.u32 %s1816_s3, 4  ;;  %s65_s29 = sshll.u32 %s1817_s28, 4  ;;  %s57_s27 = int_to_ptr.vmem [resolvable:$true] %s56_s27  ;;  %s66_s29 = int_to_ptr.vmem [resolvable:$true] %s65_s29 }
  0x1d   :  { %s1750_s30 = scalar_lea.vmem %s57_s27, 128  ;;  %p1755_p11 = scmp.lt.s32.totalorder %s57_s27, %s57_s27 }
  0x1e   :  { %p1751_p10 = scmp.ne.s32.totalorder %s57_s27, %s1750_s30  ;;  %p1756_p12 = scmp.lt.s32.totalorder %s1750_s30, %s1750_s30 }
  0x20   :  { %p1757_p13 = por %p1756_p12, %p1755_p11 }
  0x22   :  { %p1758_p0 = pnand %p1757_p13, %p1751_p10 }
  0x24   :  { %1761 = shalt.err (!%p1758_p0)
}
  0x25   :  { %59 = dma.hbm_to_vmem [thread:$0]  %s2170_s5, 128, %s57_s27, [#allocation8]  }
  0x26   :  { %s1770_s13 = scalar_lea.vmem %s66_s29, 384  ;;  %p1775_p2 = scmp.lt.s32.totalorder %s66_s29, %s66_s29 }
  0x27   :  { %p1771_p1 = scmp.ne.s32.totalorder %s66_s29, %s1770_s13  ;;  %p1776_p3 = scmp.lt.s32.totalorder %s1770_s13, %s1770_s13 }
  0x29   :  { %p1777_p4 = por %p1776_p3, %p1775_p2 }
  0x2b   :  { %p1778_p5 = pnand %p1777_p4, %p1771_p1 }
  0x2d   :  { %1781 = shalt.err (!%p1778_p5)
}
  0x2e   :  { %71 = dma.hbm_to_vmem [thread:$0]  %s2171_s6, 384, %s66_s29, [#allocation11], %s1814_s23, %s1814_s23, %s1815_s24  }
  0x2f   :  { %1802 = dma.done.wait [#allocation5], 2048  }
  0x30   :  { %1803 = vsyncadd [#allocation5], 4294965248 }
  0x31   :  { %1804 = dma.done.wait [#allocation8], 2688  }
  0x32   :  { %1805 = vsyncadd [#allocation8], 4294964608 }
  0x33   :  { %1806 = dma.done.wait [#allocation11], 384  }
  0x34   :  { %1807 = vsyncadd [#allocation11], 4294966912  ;;  %v1818_v0 = vmov 0   ;;  %v1819_v1 = vmov 0.0   ;;  %vm105_vm0 = vcmask 3072   ;;  %v177_v3 = vld [vmem:[%s2165_s0] sm:$0xff]  ;;  %v178_v17 = vlaneseq }
  0x35   :  { %1634 = vset.pattern.permute.xlu0 %v1818_v0  ;;  %1536 = vmatprep.subr.bf16.mxu0 %v1819_v1  ;;  %v101_v2 = vld [vmem:[%s2172_s7 + $0x10] sm:$0xf]  ;;  %vm2177_vm1 = vmmov 0   ;;  %v1641_v4 = vld [vmem:[%s2166_s1 + $0x18] sm:$0xff]   ;;  %v1645_v6 = vld [vmem:[#allocation4 + $0x34] ss:$8 sps:$4 sm:$0xff]  }
  0x36   :  { %359 = vmatprep.mubr.bf16.mxu1 %v1818_v0  ;;  %1635 = vset.pattern.permute.xlu1 %v1818_v0  ;;  %106 = vst.msk [vmem:[#allocation3 + $0x10] sm:$0xf] %vm105_vm0, %v101_v2  ;;  %v1642_v5 = vld [vmem:[%s2166_s1 + $0x10] sm:$0xff]   ;;  %v1647_v7 = vld [vmem:[#allocation4 + $0x30] ss:$8 sps:$4 sm:$0xff]   ;;  %vm2180_vm2 = vcmask 523264  }
  0x37   :  { %1544 = vmatprep.mubr.msk.bf16.mxu0 %vm2177_vm1, %v1819_v1  ;;  %181 = vperm.xlu0 %1634, %v177_v3   ;;  %v1648_v8 = vld [vmem:[#allocation4 + $0x24] ss:$8 sps:$4 sm:$0xff]   ;;  %v1643_v9 = vld [vmem:[%s2166_s1 + $0x8] sm:$0xff]   ;;  %v1650_v11 = vld [vmem:[#allocation4 + $0x20] ss:$8 sps:$4 sm:$0xff]   ;;  %v1936_v18 = vand.u32 127, %v178_v17 }
  0x38   :  { %1537 = vmatpush3.bf16.msra.mxu0 %v1641_v4  ;;  %335 = vmatprep.subr.bf16.mxu1 %v1645_v6  ;;  %v1644_v12 = vld [vmem:[%s2166_s1] sm:$0xff]   ;;  %v91_v15 = vld [vmem:[#allocation10] sm:$0xff]  ;;  %v111_v22 = vld [vmem:[#allocation4] sm:$0xff]  ;;  %vm2176_vm4 = vcmask 519168   ;;  %v1968_v37 = vshrl.u32 %v178_v17, 7  ;;  %s1821_s29 = smov 32  }
  0x39   :  { %1538 = vmatprep.subr.bf16.mxu0 %v1819_v1  ;;  %336 = vmatpush1.bf16.msra.mxu1 %v1647_v7  ;;  %v1651_v13 = vld [vmem:[#allocation4 + $0x14] ss:$8 sps:$4 sm:$0xff]   ;;  %v1653_v14 = vld [vmem:[#allocation4 + $0x10] ss:$8 sps:$4 sm:$0xff]   ;;  %v1654_v16 = vld [vmem:[#allocation4 + $0x4] ss:$8 sps:$4 sm:$0xff]  }
  0x3a   :  { %337 = vmatprep.subr.bf16.mxu1 %v1648_v8  ;;  %95 = vst.msk [vmem:[#allocation2] sm:$0xff] %vm2180_vm2, %v91_v15  ;;  %v112_v23 = vld [vmem:[#allocation4 + $0x8] sm:$0xff]  ;;  %v92_v25 = vld [vmem:[#allocation10 + $0x8] sm:$0xff]  ;;  %v93_v26 = vld [vmem:[#allocation10 + $0x10] sm:$0xf]  ;;  %v273_v40 = vsub.s32 0, %v1968_v37  ;;  %vm1084_vm12 = vcmp.eq.s32.totalorder %v1968_v37, %v1936_v18 }
  0x3b   :  { %v1406_v24 = vcombine.low %v111_v22, %v112_v23  ;;  %96 = vst.msk [vmem:[#allocation2 + $0x8] sm:$0xff] %vm2180_vm2, %v92_v25  ;;  %v277_v41 = vsub.s32 1, %v1968_v37  ;;  %v167_v42 = vld [vmem:[%s2169_s4] ss:$4 sm:$0x3]  ;;  %vm2179_vm5 = vcmask 1043456  }
  0x3c   :  { %1539 = vmatpush3.bf16.msra.mxu0 %v1642_v5  ;;  %98 = vst.msk [vmem:[#allocation2 + $0x10] sm:$0xf] %vm2176_vm4, %v93_v26  ;;  %v274_v45 = vrot.slane %v167_v42, %v273_v40  ;;  %s1822_s30 = smov 96   ;;  %vm392_vm6 = vcmask 261120   ;;  %vm267_vm7 = vcmp.lt.s32.totalorder %v1936_v18, 8  ;;  %vm2182_vm8 = vcmask 228352  }
  0x3d   :  { %v1366_v10 = vld [vmem:[#allocation3 + $0x10] sm:$0xf]  ;;  %1540 = vmatprep.subr.bf16.mxu0 %v1819_v1  ;;  %338 = vmatpush1.bf16.msra.mxu1 %v1650_v11  ;;  %v1981_v46 = vrot.slane %v167_v42, %v277_v41  ;;  %vm622_vm9 = vcmask 457728   ;;  %vm102_vm10 = vcmask 7168   ;;  %vm2181_vm15 = vcmask 224256   ;;  %s1826_s17 = smov [#allocation12]  }
  0x3e   :  { %1369 = vst.msk [vmem:[%s2175_s10 + $0x10] sm:$0xf] %vm105_vm0, %v1366_v10  ;;  %339 = vmatprep.subr.bf16.mxu1 %v1651_v13  ;;  %vm1142_vm0 = vcmp.lt.s32.totalorder %v1968_v37, %v1936_v18  ;;  %s1377_s18 = sshll.u32 %s1826_s17, 4  ;;  %s1378_s18 = int_to_ptr.vmem [resolvable:$true] %s1377_s18 }
  0x3f   :  { %s1782_s19 = scalar_lea.vmem %s1378_s18, 384  ;;  %p1787_p7 = scmp.lt.s32.totalorder %s1378_s18, %s1378_s18 }
  0x40   :  { %1541 = vmatpush3.bf16.msra.mxu0 %v1643_v9  ;;  %p1783_p6 = scmp.ne.s32.totalorder %s1378_s18, %s1782_s19  ;;  %p1788_p8 = scmp.lt.s32.totalorder %s1782_s19, %s1782_s19 }
  0x41   :  { %1542 = vmatprep.subr.bf16.mxu0 %v1819_v1  ;;  %340 = vmatpush1.bf16.msra.mxu1 %v1653_v14  ;;  %v1950_v28 = vld [vmem:[#allocation2] sm:$0xff] }
  0x42   :  { %341 = vmatprep.subr.bf16.mxu1 %v1654_v16  ;;  %v1946_v27 = vld [vmem:[#allocation2 + $0x8] sm:$0xff]  ;;  %p1789_p9 = por %p1788_p8, %p1787_p7 }
  0x43   :  { %1361 = vst.msk [vmem:[#allocation12 + $0x8] sm:$0xff] %vm2180_vm2, %v1946_v27  ;;  %v1960_v33 = vld [vmem:[#allocation2 + $0x10] sm:$0xf] }
  0x44   :  { %1543 = vmatpush3.bf16.msra.mxu0 %v1644_v12  ;;  %v269_v35 = vpack.c.bf16 %v1960_v33, %v1946_v27  ;;  %p1790_p10 = pnand %p1789_p9, %p1783_p6 }
  0x45   :  { %1548 = vmatprep.subr.mxu0 %v1819_v1  ;;  %342 = vmatpush1.bf16.msra.mxu1 %v1406_v24 }
  0x46   :  { %1559 = vmatprep.subr.mxu1 %v1819_v1 }
  0xb2   :  { %v182_v19 = vpop.permute.xlu0 %181 }
  0xb3   :  { %vm183_vm3 = vcmp.eq.s32.totalorder %v182_v19, %v1936_v18 }
  0xb4   :  { %v1400_v20 = vsel %vm183_vm3, 1.0, %v1819_v1 }
  0xb5   :  { %v186_v21 = vpack.c.bf16 %v1400_v20, %v1400_v20 }
  0xb7   :  { %1545 = vmatmul.mubr.msk.bf16.vlgmr.msra.gmra.mxu0 %vm2180_vm2, %v186_v21 }
  0xb8   :  { %1556 = vmatprep.mubr.msk.f32.mxu0 %vm2177_vm1, %v1819_v1 }
 0x177   :  { %v1952_v29 = vpop.f32.mrf.mxu0 }
 0x178   :  { %v268_v30 = vpack.c.bf16 %v1950_v28, %v1952_v29  ;;  %1347 = vst.msk [vmem:[#allocation2] sm:$0xff] %vm2180_vm2, %v1952_v29 }
 0x179   :  { %v1546_v31 = vpop.f32.mrf.mxu0 }
 0x17a   :  { %1414 = vmatmul.mubr.msk.bf16.vlgmr.msra.gmra.mxu1 %vm2180_vm2, %v268_v30 }
 0x17b   :  { %v260_v32 = vpop.f32.mrf.mxu0  ;;  %369 = vmatprep.mubr.bf16.mxu1 %v1818_v0 }
 0x17d   :  { %v1547_v34 = vpop.f32.mrf.mxu0 }
 0x17f   :  { %v1357_v36 = vld [vmem:[#allocation2] sm:$0xff] }
 0x180   :  { %1360 = vst.msk [vmem:[#allocation12] sm:$0xff] %vm2180_vm2, %v1357_v36 }
 0x182   :  { %1415 = vmatmul.mubr.msk.bf16.gmra.mxu1 %vm2180_vm2, %v269_v35 }
 0x183   :  { %1567 = vmatprep.mubr.msk.f32.mxu1 %vm2177_vm1, %v1819_v1 }
 0x23a   :  { %v361_v38 = vpop.f32.mrf.mxu1 }
 0x23b   :  { %v362_v58 = vadd.f32 %v361_v38, %v274_v45 }
 0x23c   :  { %v1970_v39 = vpop.f32.mrf.mxu1 }
 0x23d   :  { %v364_v16 = vadd.f32 %v1970_v39, %v1981_v46 }
 0x23e   :  { %v365_v43 = vpop.f32.mrf.mxu1 }
 0x23f   :  { %v366_v53 = vadd.f32 %v365_v43, %v274_v45  ;;  %v598_v19 = vrot.slane %v364_v16, 4 }
 0x240   :  { %v367_v44 = vpop.f32.mrf.mxu1 }
 0x241   :  { %v1984_v48 = vadd.f32 %v367_v44, %v1981_v46 }
 0x242   :  { %v371_v47 = vpop.f32.mrf.mxu1 }
 0x243   :  { %v372_v49 = vadd.f32 %v371_v47, %v274_v45  ;;  %v599_v54 = vrot.slane %v1984_v48, 4 }
 0x244   :  { %v373_v50 = vpop.f32.mrf.mxu1 }
 0x245   :  { %v1987_v51 = vadd.f32 %v373_v50, %v1981_v46  ;;  %492 = vrot.lane.b32.xlu1 %v372_v49, %s1821_s29  ;;  %v600_v20 = vsel %vm2179_vm5, %v598_v19, %v599_v54 }
 0x246   :  { %v375_v52 = vpop.f32.mrf.mxu1 }
 0x247   :  { %v601_v55 = vrot.slane %v1987_v51, 4  ;;  %v376_v56 = vadd.f32 %v375_v52, %v274_v45 }
 0x248   :  { %v377_v6 = vpop.f32.mrf.mxu1 }
 0x249   :  { %494 = vrot.lane.b32.xlu0 %v376_v56, %s1821_s29  ;;  %490 = vrot.lane.b32.xlu1 %v366_v53, %s1821_s29  ;;  %v1994_v57 = vsel %vm2179_vm5, %v599_v54, %v601_v55  ;;  %v378_v14 = vadd.f32 %v377_v6, %v1981_v46 }
 0x24b   :  { %v603_v15 = vrot.slane %v378_v14, 4 }
 0x24d   :  { %486 = vrot.lane.b32.xlu1 %v362_v58, %s1822_s30  ;;  %488 = vrot.lane.b32.xlu0 %v362_v58, %s1821_s29  ;;  %v604_v17 = vsel %vm2179_vm5, %v601_v55, %v603_v15  ;;  %v1665_v15 = vld [vmem:[#allocation4 + $0x40] ss:$8 sps:$4 sm:$0xff]  }
 0x251   :  { %388 = vrot.lane.b32.xlu1 %v372_v49, %s1811_s16  ;;  %390 = vrot.lane.b32.xlu0 %v376_v56, %s1811_s16 }
 0x255   :  { %384 = vrot.lane.b32.xlu1 %v362_v58, %s1811_s16  ;;  %386 = vrot.lane.b32.xlu0 %v366_v53, %s1811_s16  ;;  %v1426_v53 = vld [vmem:[#allocation9] ss:$0 sm:$0xff] }
 0x2b7   :  { %v493_v59 = vpop.permute.xlu1 %492 }
 0x2bb   :  { %v495_v60 = vpop.permute.xlu0 %494  ;;  %v491_v61 = vpop.permute.xlu1 %490 }
 0x2bc   :  { %1560 = vmatpush3.xpose.msk.msra.mxu1 %vm392_vm6, %v495_v60 }
 0x2bd   :  { %1561 = vmatprep.subr.mxu1 %v1819_v1 }
 0x2bf   :  { %v489_v62 = vpop.permute.xlu0 %488  ;;  %v487_v63 = vpop.permute.xlu1 %486 }
 0x2c0   :  { %1562 = vmatpush3.xpose.msk.msra.mxu1 %vm392_vm6, %v493_v59 }
 0x2c1   :  { %1563 = vmatprep.subr.mxu1 %v1819_v1 }
 0x2c3   :  { %v391_v2 = vpop.permute.xlu0 %390  ;;  %v389_v3 = vpop.permute.xlu1 %388 }
 0x2c4   :  { %1549 = vmatpush3.xpose.msk.msra.mxu0 %vm392_vm6, %v391_v2  ;;  %1564 = vmatpush3.xpose.msk.msra.mxu1 %vm392_vm6, %v491_v61 }
 0x2c5   :  { %1565 = vmatprep.subr.mxu1 %v1819_v1  ;;  %1550 = vmatprep.subr.mxu0 %v1819_v1 }
 0x2c7   :  { %v387_v4 = vpop.permute.xlu0 %386  ;;  %v385_v5 = vpop.permute.xlu1 %384 }
 0x2c8   :  { %1551 = vmatpush3.xpose.msk.msra.mxu0 %vm392_vm6, %v389_v3  ;;  %1566 = vmatpush3.xpose.msk.msra.mxu1 %vm392_vm6, %v489_v62 }
 0x2c9   :  { %1552 = vmatprep.subr.mxu0 %v1819_v1 }
 0x2cb   :  { %1568 = vmatmul.mubr.msk.f32.vlgmr.msra.gmra.mxu1 %vm392_vm6, %v487_v63 }
 0x2cc   :  { %1553 = vmatpush3.xpose.msk.msra.mxu0 %vm392_vm6, %v387_v4  ;;  %818 = vmatprep.mubr.bf16.mxu1 %v1818_v0 }
 0x2cd   :  { %1554 = vmatprep.subr.mxu0 %v1819_v1 }
 0x2d0   :  { %1555 = vmatpush3.xpose.msk.msra.mxu0 %vm392_vm6, %v385_v5 }
 0x2d1   :  { %1570 = vmatprep.subr.mxu0 %v1819_v1 }
 0x2d3   :  { %1557 = vmatmul.mubr.msk.f32.vlgmr.msra.gmra.mxu0 %vm392_vm6, %v362_v58 }
 0x2d4   :  { %1584 = vmatprep.mubr.msk.f32.mxu0 %vm2177_vm1, %v1819_v1 }
 0x38b   :  { %v572_v7 = vpop.f32.mrf.mxu1 }
 0x38c   :  { %v576_v8 = vsel %vm267_vm7, %v572_v7, -1e+30  ;;  %v99_v7 = vld [vmem:[%s2172_s7] sm:$0xff] }
 0x38d   :  { %v1569_v9 = vpop.f32.mrf.mxu1  ;;  %v577_v0 = vsel %vm2182_vm8, %v576_v8, -inf  ;;  %103 = vst.msk [vmem:[#allocation3] sm:$0xff] %vm102_vm10, %v99_v7 }
 0x38e   :  { %578 = vmax.xlane.f32.xlu0 %v577_v0  ;;  %v1656_v9 = vld [vmem:[#allocation4 + $0x70] ss:$8 sps:$4 sm:$0xff]   ;;  %v1661_v0 = vld [vmem:[#allocation4 + $0x64] ss:$8 sps:$4 sm:$0xff]  }
 0x393   :  { %v469_v10 = vpop.f32.mrf.mxu0 }
 0x394   :  { %v473_v11 = vsel %vm267_vm7, %v469_v10, -1e+30  ;;  %v1659_v10 = vld [vmem:[#allocation4 + $0x60] ss:$8 sps:$4 sm:$0xff]  }
 0x395   :  { %v1558_v12 = vpop.f32.mrf.mxu0  ;;  %v475_v13 = vsel %vm2182_vm8, %v473_v11, -inf }
 0x396   :  { %476 = vmax.xlane.f32.xlu1 %v475_v13  ;;  %v1662_v12 = vld [vmem:[#allocation4 + $0x50] ss:$8 sps:$4 sm:$0xff]  }
 0x397   :  { %v100_v13 = vld [vmem:[%s2172_s7 + $0x8] sm:$0xff] }
 0x398   :  { %104 = vst.msk [vmem:[#allocation3 + $0x8] sm:$0xff] %vm102_vm10, %v100_v13 }
 0x3a7   :  { %611 = vrot.lane.b32.xlu1 %v604_v17, %s1811_s16 }
 0x3ab   :  { %607 = vrot.lane.b32.xlu1 %v600_v20, %s1811_s16 }
 0x3af   :  { %605 = vrot.lane.b32.xlu1 %v598_v19, %s1811_s16 }
 0x417   :  { %v579_v21 = vpop.xlane.xlu0 %578 }
 0x418   :  { %v580_v22 = vsub.f32 %v576_v8, %v579_v21  ;;  %v1658_v8 = vld [vmem:[#allocation4 + $0x74] ss:$8 sps:$4 sm:$0xff]  }
 0x419   :  { %794 = vmatprep.subr.bf16.mxu1 %v1658_v8 }
 0x41a   :  { %v581_v23 = vmul.f32 1.442695, %v580_v22  ;;  %795 = vmatpush1.bf16.msra.mxu1 %v1656_v9 }
 0x41b   :  { %796 = vmatprep.subr.bf16.mxu1 %v1661_v0 }
 0x41c   :  { %1688 = vpow2.f32 %v581_v23  ;;  %v1668_v23 = vld [vmem:[#allocation7 + $0x78] sm:$0xff]  }
 0x41e   :  { %797 = vmatpush1.bf16.msra.mxu1 %v1659_v10 }
 0x41f   :  { %v477_v24 = vpop.xlane.xlu1 %476 }
 0x420   :  { %v478_v31 = vsub.f32 %v473_v11, %v477_v24  ;;  %v1664_v11 = vld [vmem:[#allocation4 + $0x54] ss:$8 sps:$4 sm:$0xff]  }
 0x421   :  { %798 = vmatprep.subr.bf16.mxu1 %v1664_v11  ;;  %v1669_v24 = vld [vmem:[#allocation7 + $0x38] sm:$0xff]   ;;  %v1824_v11 = vmov -1.0|-1.0  }
 0x422   :  { %v479_v32 = vmul.f32 1.442695, %v478_v31  ;;  %799 = vmatpush1.bf16.msra.mxu1 %v1662_v12  ;;  %v1673_v31 = vld [vmem:[#allocation7 + $0x28] sm:$0xff]   ;;  %v1825_v12 = vmov -1.0  }
 0x423   :  { %v612_v25 = vpop.permute.xlu1 %611 }
 0x424   :  { %1571 = vmatpush3.msra.mxu0 %v612_v25  ;;  %1690 = vpow2.f32 %v479_v32  ;;  %v1670_v25 = vld [vmem:[#allocation7 + $0x70] sm:$0xff]   ;;  %v1674_v32 = vld [vmem:[#allocation7 + $0x60] sm:$0xff]  }
 0x425   :  { %1572 = vmatprep.subr.mxu0 %v1819_v1 }
 0x427   :  { %v608_v36 = vpop.permute.xlu1 %607 }
 0x429   :  { %v1689_v26 = vpop.eup %1688 }
 0x42a   :  { %v583_v30 = vsel %vm2182_vm8, %v1689_v26, 0.0 }
 0x42b   :  { %584 = vadd.xlane.f32.xlu0 %v583_v30  ;;  %v606_v42 = vpop.permute.xlu1 %605  ;;  %v1672_v30 = vld [vmem:[#allocation7 + $0x68] sm:$0xff]  }
 0x42c   :  { %v617_v43 = vsel %vm2179_vm5, %v378_v14, %v606_v42  ;;  %v1667_v14 = vld [vmem:[#allocation4 + $0x44] ss:$8 sps:$4 sm:$0xff]  }
 0x42d   :  { %800 = vmatprep.subr.bf16.mxu1 %v1667_v14 }
 0x42e   :  { %801 = vmatpush1.bf16.msra.mxu1 %v1665_v15 }
 0x42f   :  { %1587 = vmatprep.subr.bf16.mxu1 %v1819_v1 }
 0x431   :  { %v1691_v34 = vpop.eup %1690 }
 0x432   :  { %v481_v35 = vsel %vm2182_vm8, %v1691_v34, 0.0 }
 0x441   :  { %609 = vrot.lane.b32.xlu0 %v1994_v57, %s1811_s16  ;;  %s1823_s16 = smov 28  }
 0x460   :  { %482 = vadd.xlane.f32.xlu0 %v481_v35  ;;  %v1675_v35 = vld [vmem:[#allocation7 + $0x20] sm:$0xff]  }
 0x4b4   :  { %v585_v38 = vpop.xlane.xlu0 %584 }
 0x4b5   :  { %1692 = vrcp.f32 %v585_v38 }
 0x4b8   :  { %v610_v39 = vpop.permute.xlu0 %609 }
 0x4b9   :  { %1573 = vmatpush3.msra.mxu0 %v610_v39  ;;  %v1428_v39 = vld [vmem:[#allocation9 + $0x1] ss:$0 sm:$0xff] }
 0x4ba   :  { %1574 = vmatprep.subr.mxu0 %v1819_v1 }
 0x4bb   :  { %1575 = vmatpush3.msra.mxu0 %v608_v36  ;;  %v1676_v36 = vld [vmem:[#allocation7 + $0x58] sm:$0xff]  }
 0x4bc   :  { %1576 = vmatprep.subr.mxu0 %v1819_v1 }
 0x4bd   :  { %1577 = vmatpush3.msra.mxu0 %v617_v43  ;;  %v1429_v43 = vld [vmem:[#allocation9 + $0x2] ss:$0 sm:$0xff] }
 0x4be   :  { %1578 = vmatprep.subr.mxu0 %v1819_v1 }
 0x4bf   :  { %1579 = vmatpush3.msra.mxu0 %v1987_v51 }
 0x4c0   :  { %1580 = vmatprep.subr.mxu0 %v1819_v1 }
 0x4c1   :  { %1581 = vmatpush3.msra.mxu0 %v1984_v48 }
 0x4c2   :  { %v1693_v44 = vpop.eup %1692  ;;  %1582 = vmatprep.subr.mxu0 %v1819_v1 }
 0x4c3   :  { %1583 = vmatpush3.msra.mxu0 %v364_v16  ;;  %v587_v45 = vmul.f32 %v1693_v44, %v1689_v26  ;;  %v1365_v16 = vld [vmem:[#allocation3 + $0x8] sm:$0xff]  ;;  %v1677_v44 = vld [vmem:[#allocation7 + $0x18] sm:$0xff]  }
 0x4c4   :  { %1368 = vst.msk [vmem:[%s2175_s10 + $0x8] sm:$0xff] %vm102_vm10, %v1365_v16  ;;  %1502 = vmatprep.subr.bf16.mxu0 %v1668_v23  ;;  %v1671_v26 = vld [vmem:[#allocation7 + $0x30] sm:$0xff]   ;;  %v2090_v23 = vadd.s32 8, %v1968_v37 }
 0x4c5   :  { %589 = vrot.lane.b32.xlu0 %v587_v45, %s1823_s16 }
 0x4c6   :  { %vm1085_vm11 = vcmp.eq.s32.totalorder %v2090_v23, %v1936_v18  ;;  %vm1143_vm6 = vcmp.lt.s32.totalorder %v2090_v23, %v1936_v18 }
 0x4e9   :  { %v483_v46 = vpop.xlane.xlu0 %482 }
 0x4ea   :  { %1694 = vrcp.f32 %v483_v46  ;;  %v1678_v46 = vld [vmem:[#allocation7 + $0x50] sm:$0xff]  }
 0x4f7   :  { %v1695_v47 = vpop.eup %1694 }
 0x4f8   :  { %v485_v49 = vmul.f32 %v1695_v47, %v1691_v34 }
 0x4fa   :  { %v696_v50 = vadd.f32 %v587_v45, %v485_v49 }
 0x4fc   :  { %v697_v58 = vmul.f32 0.5, %v696_v50 }
 0x4fe   :  { %v698_v59 = vadd.f32 1e-10, %v697_v58 }
 0x500   :  { %1696 = vlog2.f32 %v698_v59 }
 0x50d   :  { %v1697_v60 = vpop.eup %1696 }
 0x50e   :  { %v700_v2 = vmul.f32 0.6931472, %v1697_v60 }
 0x510   :  { %v701_v5 = vmul.f32 %v700_v2, %v697_v58 }
 0x512   :  { %v702_v6 = vsel %vm2182_vm8, %v701_v5, 0.0 }
 0x537   :  { %v590_v52 = vpop.permute.xlu0 %589 }
 0x538   :  { %v592_v51 = vsel %vm2182_vm8, %v485_v49, %v590_v52  ;;  %v1679_v49 = vld [vmem:[#allocation7 + $0x10] sm:$0xff]   ;;  %v1680_v52 = vld [vmem:[#allocation7 + $0x48] sm:$0xff]  }
 0x539   :  { %1585 = vmatmul.mubr.msk.f32.vlgmr.msra.gmra.mxu0 %vm622_vm9, %v592_v51  ;;  %v1681_v51 = vld [vmem:[#allocation7 + $0x8] sm:$0xff]  }
 0x53a   :  { %1503 = vmatpush3.bf16.msra.mxu0 %v1669_v24 }
 0x53b   :  { %1504 = vmatprep.subr.bf16.mxu0 %v1670_v25  ;;  %v2093_v25 = vadd.s32 16, %v1968_v37 }
 0x53d   :  { %vm1086_vm13 = vcmp.eq.s32.totalorder %v2093_v25, %v1936_v18 }
 0x53e   :  { %1505 = vmatpush3.bf16.msra.mxu0 %v1671_v26 }
 0x53f   :  { %1506 = vmatprep.subr.bf16.mxu0 %v1672_v30  ;;  %v1465_v30 = vsel %vm1085_vm11, 1.0, %v1819_v1 }
 0x542   :  { %1507 = vmatpush3.bf16.msra.mxu0 %v1673_v31  ;;  %v1075_v31 = vadd.s32 24, %v1968_v37 }
 0x543   :  { %1508 = vmatprep.subr.bf16.mxu0 %v1674_v32  ;;  %v1464_v32 = vsel %vm1084_vm12, 1.0, %v1819_v1 }
 0x544   :  { %vm1087_vm14 = vcmp.eq.s32.totalorder %v1075_v31, %v1936_v18 }
 0x546   :  { %1509 = vmatpush3.bf16.msra.mxu0 %v1675_v35 }
 0x547   :  { %1510 = vmatprep.subr.bf16.mxu0 %v1676_v36 }
 0x54a   :  { %1511 = vmatpush3.bf16.msra.mxu0 %v1677_v44  ;;  %v1467_v44 = vsel %vm1087_vm14, 1.0, %v1819_v1  ;;  %vm1144_vm14 = vcmp.lt.s32.totalorder %v2093_v25, %v1936_v18 }
 0x54b   :  { %1512 = vmatprep.subr.bf16.mxu0 %v1678_v46 }
 0x54e   :  { %1513 = vmatpush3.bf16.msra.mxu0 %v1679_v49 }
 0x54f   :  { %1514 = vmatprep.subr.bf16.mxu0 %v1680_v52 }
 0x552   :  { %1515 = vmatpush3.bf16.msra.mxu0 %v1681_v51 }
 0x5f9   :  { %v692_v54 = vpop.f32.mrf.mxu0 }
 0x5fa   :  { %v693_v48 = vadd.f32 %v1426_v53, %v692_v54  ;;  %v1682_v53 = vld [vmem:[#allocation7 + $0x40] sm:$0xff]  }
 0x5fb   :  { %v1586_v55 = vpop.f32.mrf.mxu0  ;;  %v1683_v54 = vld [vmem:[#allocation7] sm:$0xff]   ;;  %1516 = vmatprep.subr.bf16.mxu0 %v1682_v53 }
 0x5fc   :  { %v706_v56 = vadd.f32 %v693_v48, %v1952_v29  ;;  %1517 = vmatpush3.bf16.msra.mxu0 %v1683_v54  ;;  %v1399_v48 = vld [vmem:[%s2169_s4 + $0x1] ss:$4 sm:$0x3] }
 0x5fd   :  { %v736_v55 = vrot.slane %v1399_v48, %v273_v40 }
 0x5fe   :  { %v707_v57 = vsel %vm2180_vm2, %v706_v56, 0.0 }
 0x5ff   :  { %708 = vadd.xlane.f32.xlu1 %v707_v57 }
 0x688   :  { %v709_v61 = vpop.xlane.xlu1 %708 }
 0x689   :  { %v711_v62 = vmul.f32 0.015625, %v709_v61 }
 0x68b   :  { %v712_v63 = vsub.f32 %v706_v56, %v711_v62  ;;  %v740_v56 = vrot.slane %v1399_v48, %v277_v41 }
 0x68d   :  { %v713_v3 = vmul.f32 %v712_v63, %v712_v63 }
 0x68f   :  { %v714_v4 = vsel %vm2180_vm2, %v713_v3, 0.0 }
 0x690   :  { %715 = vadd.xlane.f32.xlu0 %v714_v4 }
 0x694   :  { %703 = vadd.xlane.f32.xlu0 %v702_v6  ;;  %v1455_v6 = vld [vmem:[#allocation9 + $0x3] ss:$0 sm:$0xff] }
 0x719   :  { %v716_v17 = vpop.xlane.xlu0 %715 }
 0x71a   :  { %v717_v19 = vmul.f32 0.015625, %v716_v17 }
 0x71c   :  { %v718_v20 = vadd.f32 1e-05, %v717_v19  ;;  %v1684_v19 = vld [vmem:[#allocation7 + $0x98] sm:$0xff]  }
 0x71d   :  { %v704_v21 = vpop.xlane.xlu0 %703 }
 0x71e   :  { %1698 = vrsqrt.f32 %v718_v20  ;;  %v705_v22 = vsub.f32 0.0, %v704_v21  ;;  %v1685_v20 = vld [vmem:[#allocation7 + $0x90] sm:$0xff]   ;;  %v1686_v21 = vld [vmem:[#allocation7 + $0x88] sm:$0xff]  }
 0x720   :  { %1349 = vst.msk [vmem:[#allocation3] sm:$0xff] %vm102_vm10, %v705_v22  ;;  %1098 = vperm.xlu0 %1634, %v705_v22   ;;  %v1687_v22 = vld [vmem:[#allocation7 + $0x80] sm:$0xff]  }
 0x727   :  { %v1364_v34 = vld [vmem:[#allocation3] sm:$0xff] }
 0x728   :  { %1367 = vst.msk [vmem:[%s2175_s10] sm:$0xff] %vm102_vm10, %v1364_v34 }
 0x72b   :  { %v1699_v38 = vpop.eup %1698 }
 0x72c   :  { %v720_v42 = vmul.f32 %v1699_v38, %v712_v63  ;;  %v1466_v38 = vsel %vm1086_vm13, 1.0, %v1819_v1 }
 0x72e   :  { %v725_v45 = vmul.f32 %v1428_v39, %v720_v42 }
 0x730   :  { %v730_v47 = vadd.f32 %v1429_v43, %v725_v45 }
 0x732   :  { %v731_v50 = vpack.c.bf16 %v730_v47, %v730_v47 }
 0x734   :  { %1438 = vmatmul.mubr.msk.bf16.vlgmr.msra.gmra.mxu1 %vm2180_vm2, %v731_v50 }
 0x735   :  { %1595 = vmatprep.mubr.msk.bf16.mxu1 %vm2177_vm1, %v1819_v1  ;;  %1588 = vmatpush3.bf16.msra.mxu1 %v1684_v19  ;;  %v1457_v19 = vld [vmem:[#allocation9 + $0x5] ss:$0 sm:$0xff] }
 0x736   :  { %1589 = vmatprep.subr.bf16.mxu1 %v1819_v1 }
 0x739   :  { %1590 = vmatpush3.bf16.msra.mxu1 %v1685_v20 }
 0x73a   :  { %1591 = vmatprep.subr.bf16.mxu1 %v1819_v1 }
 0x73d   :  { %1592 = vmatpush3.bf16.msra.mxu1 %v1686_v21 }
 0x73e   :  { %1593 = vmatprep.subr.bf16.mxu1 %v1819_v1 }
 0x741   :  { %1594 = vmatpush3.bf16.msra.mxu1 %v1687_v22 }
 0x742   :  { %1599 = vmatprep.subr.mxu1 %v1819_v1 }
 0x79b   :  { %v1099_v34 = vpop.permute.xlu0 %1098 }
 0x79c   :  { %v1116_v39 = vmul.f32 %v1464_v32, %v1099_v34 }
 0x79e   :  { %v1120_v46 = vsel %vm2182_vm8, %v1116_v39, 0.0 }
 0x7f4   :  { %v820_v57 = vpop.f32.mrf.mxu1 }
 0x7f5   :  { %v821_v58 = vadd.f32 %v820_v57, %v736_v55 }
 0x7f6   :  { %v822_v59 = vpop.f32.mrf.mxu1 }
 0x7f7   :  { %v823_v60 = vadd.f32 %v822_v59, %v740_v56  ;;  %v827_v61 = vmax.f32 %v821_v58, 0.0 }
 0x7f8   :  { %v824_v62 = vpop.f32.mrf.mxu1 }
 0x7f9   :  { %v828_v63 = vmax.f32 %v823_v60, 0.0  ;;  %v829_v4 = vpack.c.bf16 %v827_v61, %v827_v61 }
 0x7fa   :  { %v825_v2 = vpop.f32.mrf.mxu1 }
 0x7fb   :  { %v830_v3 = vpack.c.bf16 %v828_v63, %v828_v63 }
 0x7fd   :  { %959 = vmatprep.mubr.bf16.mxu0 %v830_v3 }
 0x7fe   :  { %960 = vmatmul.mubr.bf16.vlgmr.msra.gmra.mxu0 %v829_v4 }
 0x8be   :  { %v1518_v5 = vpop.f32.mrf.mxu0 }
 0x8c0   :  { %v1519_v7 = vpop.f32.mrf.mxu0 }
 0x8c1   :  { %v1520_v8 = vadd.f32 %v1519_v7, %v1518_v5 }
 0x8c2   :  { %v1521_v40 = vpop.f32.mrf.mxu0 }
 0x8c3   :  { %v971_v9 = vadd.f32 %v1520_v8, %v1455_v6 }
 0x8c4   :  { %v1522_v0 = vpop.f32.mrf.mxu0 }
 0x8c5   :  { %v972_v41 = vadd.f32 %v971_v9, %v730_v47 }
 0x8c7   :  { %v973_v10 = vsel %vm2180_vm2, %v972_v41, 0.0 }
 0x8c8   :  { %974 = vadd.xlane.f32.xlu1 %v973_v10 }
 0x8d9   :  { %1637 = vperm.xlu1 %1635, %v1824_v11  }
 0x8dd   :  { %1113 = vperm.xlu1 %1635, %v1825_v12  }
 0x951   :  { %v975_v13 = vpop.xlane.xlu1 %974 }
 0x952   :  { %v976_v14 = vmul.f32 0.015625, %v975_v13 }
 0x954   :  { %v2080_v15 = vsub.f32 %v972_v41, %v976_v14  ;;  %v1456_v14 = vld [vmem:[#allocation9 + $0x4] ss:$0 sm:$0xff] }
 0x955   :  { %v1638_v24 = vpop.permute.xlu1 %1637 }
 0x956   :  { %v978_v16 = vmul.f32 %v2080_v15, %v2080_v15  ;;  %v1639_v26 = vunpack.i.l.bf16 %v1638_v24  ;;  %v1640_v35 = vunpack.i.h.bf16 %v1638_v24 }
 0x958   :  { %v979_v17 = vsel %vm2180_vm2, %v978_v16, 0.0  ;;  %v1117_v36 = vmul.f32 %v1639_v26, %v1465_v30  ;;  %v1118_v42 = vmul.f32 %v1640_v35, %v1466_v38 }
 0x959   :  { %980 = vadd.xlane.f32.xlu0 %v979_v17  ;;  %v1114_v45 = vpop.permute.xlu1 %1113 }
 0x95a   :  { %v1121_v43 = vsel %vm2182_vm8, %v1117_v36, 0.0  ;;  %v1119_v49 = vmul.f32 %v1467_v44, %v1114_v45  ;;  %v1123_v50 = vsel %vm2182_vm8, %v1118_v42, 0.0 }
 0x95b   :  { %v1122_v47 = vadd.f32 %v1121_v43, %v1120_v46 }
 0x95c   :  { %v1126_v51 = vsel %vm2181_vm15, %v1119_v49, 0.0  ;;  %vm1145_vm15 = vcmp.lt.s32.totalorder %v1075_v31, %v1936_v18 }
 0x95d   :  { %v1124_v52 = vadd.f32 %v1123_v50, %v1122_v47 }
 0x95f   :  { %v1127_v53 = vadd.f32 %v1126_v51, %v1124_v52 }
 0x961   :  { %v1128_v54 = vrot.slane %v1127_v53, 4 }
 0x963   :  { %v1129_v48 = vadd.f32 %v1128_v54, %v1127_v53 }
 0x965   :  { %v1130_v55 = vrot.slane %v1129_v48, 2 }
 0x967   :  { %v1131_v56 = vadd.f32 %v1130_v55, %v1129_v48 }
 0x969   :  { %v1132_v57 = vrot.slane %v1131_v56, 1 }
 0x96b   :  { %v1133_v58 = vadd.f32 %v1132_v57, %v1131_v56 }
 0x96d   :  { %vm1138_vm3 = vcmp.eq.f32.partialorder %v1099_v34, %v1133_v58  ;;  %vm1139_vm7 = vcmp.eq.f32.partialorder %v1639_v26, %v1133_v58  ;;  %vm1134_vm9 = vcmp.gt.f32.partialorder %v1099_v34, %v1133_v58  ;;  %vm1135_vm11 = vcmp.gt.f32.partialorder %v1639_v26, %v1133_v58 }
 0x96e   :  { %vm1146_vm10 = vmand %vm1138_vm3, %vm1142_vm0  ;;  %vm1140_vm4 = vcmp.eq.f32.partialorder %v1640_v35, %v1133_v58  ;;  %vm1136_vm5 = vcmp.gt.f32.partialorder %v1640_v35, %v1133_v58  ;;  %vm1141_vm8 = vcmp.eq.f32.partialorder %v1114_v45, %v1133_v58  ;;  %vm2183_vm3 = vcmask 228352  }
 0x96f   :  { %vm1147_vm12 = vmand %vm1139_vm7, %vm1143_vm6  ;;  %vm1137_vm7 = vcmp.gt.f32.partialorder %v1114_v45, %v1133_v58 }
 0x970   :  { %vm1150_vm13 = vmor %vm1134_vm9, %vm1146_vm10 }
 0x971   :  { %vm1151_vm1 = vmor %vm1135_vm11, %vm1147_vm12  ;;  %v1468_v59 = vsel %vm1150_vm13, 1.0, %v1819_v1 }
 0x972   :  { %vm1148_vm2 = vmand %vm1140_vm4, %vm1144_vm14  ;;  %v1469_v60 = vsel %vm1151_vm1, 1.0, %v1819_v1  ;;  %v1162_v61 = vsel %vm2183_vm3, %v1468_v59, 0.0  ;;  %vm2186_vm1 = vcmask 224256   ;;  %vm2188_vm4 = vcmask 1043456  }
 0x973   :  { %vm1152_vm0 = vmor %vm1136_vm5, %vm1148_vm2  ;;  %vm2187_vm2 = vcmask 523264   ;;  %vm2189_vm5 = vmmov 0  }
 0x974   :  { %vm2184_vm6 = vmmov %vm2183_vm3  ;;  %v1470_v63 = vsel %vm1152_vm0, 1.0, %v1819_v1 }
 0x975   :  { %v1163_v62 = vsel %vm2184_vm6, %v1469_v60, 0.0  ;;  %vm1149_vm9 = vmand %vm1141_vm8, %vm1145_vm15 }
 0x976   :  { %v1164_v2 = vadd.f32 %v1163_v62, %v1162_v61  ;;  %vm1153_vm10 = vmor %vm1137_vm7, %vm1149_vm9 }
 0x977   :  { %vm2185_vm11 = vmmov %vm2183_vm3  ;;  %v1471_v4 = vsel %vm1153_vm10, 1.0, %v1819_v1 }
 0x978   :  { %v1165_v3 = vsel %vm2185_vm11, %v1470_v63, 0.0  ;;  %v1167_v6 = vsel %vm2186_vm1, %v1471_v4, 0.0  ;;  %vm2190_vm15 = vmmov %vm2183_vm3 }
 0x979   :  { %v1166_v5 = vadd.f32 %v1165_v3, %v1164_v2  ;;  %vm2191_vm13 = vmmov %vm2183_vm3 }
 0x97a   :  { %vm2192_vm0 = vmmov %vm2183_vm3  ;;  %vm2193_vm3 = vcmask 519168  }
 0x97b   :  { %v1168_v7 = vadd.f32 %v1167_v6, %v1166_v5 }
 0x97d   :  { %v1169_v8 = vrot.slane %v1168_v7, 4 }
 0x97f   :  { %v1170_v0 = vadd.f32 %v1169_v8, %v1168_v7 }
 0x981   :  { %v1171_v10 = vrot.slane %v1170_v0, 2 }
 0x983   :  { %v1172_v11 = vadd.f32 %v1171_v10, %v1170_v0 }
 0x985   :  { %v1173_v12 = vrot.slane %v1172_v11, 1 }
 0x987   :  { %v1174_v16 = vadd.f32 %v1173_v12, %v1172_v11 }
 0x989   :  { %v1616_v22 = vtrunc.f32 %v1174_v16 }
 0x98b   :  { %v1617_v26 = vcvt.f32.s32 %v1616_v22 }
 0x98d   :  { %vm1176_vm8 = vcmp.eq.s32.totalorder %v1617_v26, %v1968_v37  ;;  %vm1177_vm12 = vcmp.eq.s32.totalorder %v1617_v26, %v2090_v23  ;;  %vm1178_vm14 = vcmp.eq.s32.totalorder %v1617_v26, %v2093_v25 }
 0x9e2   :  { %v981_v40 = vpop.xlane.xlu0 %980 }
 0x9e3   :  { %v982_v9 = vmul.f32 0.015625, %v981_v40 }
 0x9e5   :  { %v983_v41 = vadd.f32 1e-05, %v982_v9 }
 0x9e7   :  { %1700 = vrsqrt.f32 %v983_v41 }
 0x9f4   :  { %v1701_v13 = vpop.eup %1700 }
 0x9f5   :  { %v985_v17 = vmul.f32 %v1701_v13, %v2080_v15  ;;  %v1472_v15 = vsel %vm1176_vm8, 1.0, %v1819_v1 }
 0x9f7   :  { %v990_v20 = vmul.f32 %v1456_v14, %v985_v17 }
 0x9f9   :  { %v995_v21 = vadd.f32 %v1457_v19, %v990_v20 }
 0x9fb   :  { %v996_v24 = vpack.c.bf16 %v995_v21, %v995_v21 }
 0x9fd   :  { %1596 = vmatmul.mubr.msk.bf16.vlgmr.msra.gmra.mxu1 %vm2187_vm2, %v996_v24 }
 0x9fe   :  { %1600 = vmatpush3.msk.msra.mxu1 %vm2188_vm4, %v1960_v33  ;;  %1607 = vmatprep.mubr.msk.f32.mxu1 %vm2189_vm5, %v1819_v1 }
 0x9ff   :  { %1601 = vmatprep.subr.mxu1 %v1819_v1 }
 0xa00   :  { %1602 = vmatpush3.msra.mxu1 %v1946_v27  ;;  %v1473_v27 = vsel %vm1177_vm12, 1.0, %v1819_v1 }
 0xa01   :  { %1603 = vmatprep.subr.mxu1 %v1819_v1 }
 0xa02   :  { %1604 = vmatpush3.msra.mxu1 %v1950_v28  ;;  %v1474_v28 = vsel %vm1178_vm14, 1.0, %v1819_v1 }
 0xa03   :  { %1605 = vmatprep.subr.mxu1 %v1819_v1 }
 0xa04   :  { %1606 = vmatpush3.msra.mxu1 %v1952_v29  ;;  %v1359_v29 = vld [vmem:[#allocation2 + $0x10] sm:$0xf] }
 0xa05   :  { %1608 = vmatmul.mubr.msk.f32.vlgmr.msra.gmra.mxu1 %vm2190_vm15, %v1472_v15  ;;  %1363 = vst.msk [vmem:[#allocation12 + $0x10] sm:$0xf] %vm2193_vm3, %v1359_v29 }
 0xa06   :  { %1610 = vmatprep.mubr.msk.f32.mxu1 %vm2189_vm5, %v1819_v1 }
 0xa09   :  { %1611 = vmatmul.mubr.msk.f32.gmra.mxu1 %vm2191_vm13, %v1473_v27 }
 0xa0a   :  { %1613 = vmatprep.mubr.msk.f32.mxu1 %vm2189_vm5, %v1819_v1 }
 0xa0d   :  { %1614 = vmatmul.mubr.msk.f32.gmra.mxu1 %vm2192_vm0, %v1474_v28 }
 0xa0e   :  { %1793 = shalt.err (!%p1790_p10)
}
 0xa0f   :  { %1383 = dma.vmem_to_hbm [thread:$0]  %s1378_s18, 384, %s2174_s9, [#allocation6], %s1814_s23, %s1814_s23, %s1815_s24   ;;  %vm1350_vm6 = vcmp.eq.s32.totalorder %v1936_v18, 50 }
 0xa10   :  { %v1458_v1 = vld [vmem:[%s2169_s4 + $0x2] ss:$0 sm:$0xff] }
 0xabd   :  { %v1062_v33 = vpop.f32.mrf.mxu1 }
 0xabe   :  { %v1063_v37 = vadd.f32 %v1458_v1, %v1062_v33 }
 0xabf   :  { %v1597_v23 = vpop.f32.mrf.mxu1 }
 0xac0   :  { %v1352_v25 = vsel %vm1350_vm6, 1.0, %v1063_v37 }
 0xac1   :  { %1353 = vst [vmem:[%s2173_s8] sm:$0xff] %v1352_v25  ;;  %v1065_v30 = vpop.f32.mrf.mxu1 }
 0xac3   :  { %v1598_v31 = vpop.f32.mrf.mxu1 }
 0xac5   :  { %v1263_v32 = vpop.f32.mrf.mxu1 }
 0xac7   :  { %v1609_v34 = vpop.f32.mrf.mxu1 }
 0xac9   :  { %v1268_v35 = vpop.f32.mrf.mxu1 }
 0xacb   :  { %v1612_v36 = vpop.f32.mrf.mxu1 }
 0xacd   :  { %v1273_v38 = vpop.f32.mrf.mxu1 }
 0xacf   :  { %v1615_v39 = vpop.f32.mrf.mxu1 }
 0xad0   :  { %1808 = dma.done.wait [#allocation6], 384  }
 0xad1   :  { %1809 = vsyncadd [#allocation6], 4294966912 }
 0xad2   :  { %1393 = vsyncpa [#allocation5], 1 }
 0xad3   :  { %1394 = vsyncpa [#allocation8], 1 }
 0xad4   :  { %1395 = vsyncpa [#allocation11], 1 }
 0xad5   :  { %1396 = vsyncpa [#allocation6], 1 }

</bundles_post_ra>
